<compile_context>
chip_gen: v7x
topology: tpu7x:2x2x1
jax: 0.10.0
libtpu: 0.0.40
codegen_flags: <defaults>
</compile_context>

<pallas_src>
import math

import jax
import jax.numpy as jnp
from jax import lax
from jax.experimental import pallas as pl
from jax.experimental.pallas import tpu as pltpu


def _round_up(n, m):
    return ((n + m - 1) // m) * m


# ----------------------------------------------------------------------------
# Fused LeNet kernel: conv1 -> pool -> relu -> conv2 -> pool -> relu -> fc1/2/3
# ----------------------------------------------------------------------------
def lenet_kernel(x_ref, t1_ref, b1_ref, t2_ref, b2_ref,
                 fw1_ref, fb1_ref, fw2_ref, fb2_ref, fw3_ref, fb3_ref,
                 out_ref):
    # x_ref  : (28, BB, 28)   raw input, [h, b, w], bf16
    # t1_ref : (2, 5, 28, 72) conv1 banded weights (even/odd out col), bf16
    # t2_ref : (2, 5, 72, 64) conv2 banded weights (even/odd out col), bf16
    # fw1_ref: (256, 120)     fc1 weight, rows in (hp, wp, co) order, bf16
    # biases : f32, laid out to match the lane order of each activation
    # out_ref: (BB, output_dim), f32
    BB = x_ref.shape[1]

    x = x_ref[...]                                      # bf16 (28, BB, 28)
    t1 = t1_ref[...]
    t2 = t2_ref[...]

    # ---- conv1: 2 x 5 banded MXU matmuls, f32 accumulation ----
    # acc_e[(h, b), wp*6+co] = conv1 output at width 2*wp,   height h
    # acc_o[(h, b), wp*6+co] = conv1 output at width 2*wp+1, height h
    acc_e = jnp.zeros((24 * BB, 72), jnp.float32)
    acc_o = jnp.zeros((24 * BB, 72), jnp.float32)
    for kh in range(5):
        lhs = x[kh:kh + 24].reshape(24 * BB, 28)        # leading-dim slice
        acc_e = acc_e + jnp.dot(lhs, t1[0, kh],
                                preferred_element_type=jnp.float32)
        acc_o = acc_o + jnp.dot(lhs, t1[1, kh],
                                preferred_element_type=jnp.float32)

    # ---- 2x2 maxpool (height: leading-dim reshape; width: even-vs-odd max)
    #      then bias + relu in f32 ----
    ce = acc_e.reshape(12, 2, BB, 72)
    co = acc_o.reshape(12, 2, BB, 72)
    pooled1 = jnp.maximum(jnp.maximum(ce[:, 0], ce[:, 1]),
                          jnp.maximum(co[:, 0], co[:, 1]))   # (12, BB, 72)
    h1 = jnp.maximum(pooled1 + b1_ref[...], 0.0)
    h1 = h1.astype(jnp.bfloat16)                        # lanes = wp*6 + ci

    # ---- conv2: same banded scheme on the 12x12 pooled map ----
    a2e = jnp.zeros((8 * BB, 64), jnp.float32)
    a2o = jnp.zeros((8 * BB, 64), jnp.float32)
    for kh in range(5):
        lhs = h1[kh:kh + 8].reshape(8 * BB, 72)
        a2e = a2e + jnp.dot(lhs, t2[0, kh],
                            preferred_element_type=jnp.float32)
        a2o = a2o + jnp.dot(lhs, t2[1, kh],
                            preferred_element_type=jnp.float32)

    c2e = a2e.reshape(4, 2, BB, 64)
    c2o = a2o.reshape(4, 2, BB, 64)
    pooled2 = jnp.maximum(jnp.maximum(c2e[:, 0], c2e[:, 1]),
                          jnp.maximum(c2o[:, 0], c2o[:, 1]))  # (4, BB, 64)
    h2 = jnp.maximum(pooled2 + b2_ref[...], 0.0)
    h2 = h2.astype(jnp.bfloat16)                        # lanes = wp*16 + co

    # ---- fc1: single K=256 MXU dot (NCHW flatten folded into fw1) ----
    zin = jnp.concatenate([h2[0], h2[1], h2[2], h2[3]], axis=-1)   # (BB, 256)
    z = jnp.dot(zin, fw1_ref[...],
                preferred_element_type=jnp.float32) + fb1_ref[...]
    z = jnp.maximum(z, 0.0)

    # ---- fc2 -> relu -> fc3 ----
    z = jnp.dot(z.astype(jnp.bfloat16), fw2_ref[...],
                preferred_element_type=jnp.float32) + fb2_ref[...]
    z = jnp.maximum(z, 0.0)
    out_ref[...] = (jnp.dot(z.astype(jnp.bfloat16), fw3_ref[...],
                            preferred_element_type=jnp.float32)
                    + fb3_ref[...])


# ----------------------------------------------------------------------------
# Wrapper: tiny one-time weight re-layouts (banded conv weights), one call
# ----------------------------------------------------------------------------
def lenet_forward(x_nchw, params):
    B = x_nchw.shape[0]
    output_dim = params["fc3_w"].shape[1]

    # Batch block: multiple of 8 sublanes; cap at 64 so the per-step padded
    # VMEM working set stays ~6-7 MiB and large batches give a >=2-step grid
    # for v7x's second TensorCore.
    BB = min(64, _round_up(B, 8))
    Bp = _round_up(B, BB)

    x = x_nchw.astype(jnp.float32)[:, 0]                 # (B, 28, 28)
    if Bp != B:
        x = jnp.pad(x, ((0, Bp - B), (0, 0), (0, 0)))
    xk = jnp.transpose(x, (1, 0, 2)).astype(jnp.bfloat16)  # (28, Bp, 28)

    # --- banded ("Toeplitz-in-width") conv weights, even/odd output columns ---
    w1 = params["conv1_w"].astype(jnp.float32)[:, 0]     # (6, 5, 5)  [co, kh, kw]
    w2 = params["conv2_w"].astype(jnp.float32)           # (16, 6, 5, 5)
    d = jnp.arange(5)[None, None, :]

    wi1 = jnp.arange(28)[:, None, None]
    wp1 = jnp.arange(12)[None, :, None]
    t1_parts = []
    for off in (0, 1):
        sel = (wi1 == 2 * wp1 + off + d).astype(jnp.float32)      # (28, 12, 5)
        # T1[kh, w_in, wp*6+co] = w1[co, kh, w_in - (2*wp+off)]
        t1_parts.append(jnp.einsum('iwd,ckd->kiwc', sel, w1).reshape(5, 28, 72))
    t1 = jnp.stack(t1_parts).astype(jnp.bfloat16)                 # (2, 5, 28, 72)

    wi2 = jnp.arange(12)[:, None, None]
    wp2 = jnp.arange(4)[None, :, None]
    t2_parts = []
    for off in (0, 1):
        sel = (wi2 == 2 * wp2 + off + d).astype(jnp.float32)      # (12, 4, 5)
        # T2[kh, ww*6+ci, wp*16+co] = w2[co, ci, kh, ww - (2*wp+off)]
        t2_parts.append(jnp.einsum('iwd,ockd->kicwo', sel, w2).reshape(5, 72, 64))
    t2 = jnp.stack(t2_parts).astype(jnp.bfloat16)                 # (2, 5, 72, 64)

    # Bias lanes match the activation lane layouts.
    b1 = jnp.tile(params["conv1_b"].astype(jnp.float32), 12).reshape(1, 72)
    b2 = jnp.tile(params["conv2_b"].astype(jnp.float32), 4).reshape(1, 64)

    # fc1: torch flatten order is (co, hp, wp); our lanes are hp*64+wp*16+co.
    fw = params["fc1_w"].astype(jnp.float32).reshape(16, 4, 4, 120)
    fw1 = jnp.transpose(fw, (1, 2, 0, 3)).reshape(256, 120).astype(jnp.bfloat16)
    fb1 = params["fc1_b"].astype(jnp.float32).reshape(1, 120)
    fw2 = params["fc2_w"].astype(jnp.bfloat16)
    fb2 = params["fc2_b"].astype(jnp.float32).reshape(1, 84)
    fw3 = params["fc3_w"].astype(jnp.bfloat16)
    fb3 = params["fc3_b"].astype(jnp.float32).reshape(1, output_dim)

    def full_spec(shape):
        return pl.BlockSpec(shape, lambda *_: (0,) * len(shape))

    out = pl.pallas_call(
        lenet_kernel,
        out_shape=jax.ShapeDtypeStruct((Bp, output_dim), jnp.float32),
        grid=(Bp // BB,),
        in_specs=[
            pl.BlockSpec((28, BB, 28), lambda i: (0, i, 0)),      # raw input
            full_spec((2, 5, 28, 72)), full_spec((1, 72)),        # conv1
            full_spec((2, 5, 72, 64)), full_spec((1, 64)),        # conv2
            full_spec((256, 120)), full_spec((1, 120)),           # fc1
            full_spec((120, 84)), full_spec((1, 84)),             # fc2
            full_spec((84, output_dim)), full_spec((1, output_dim)),  # fc3
        ],
        out_specs=pl.BlockSpec((BB, output_dim), lambda i: (i, 0)),
        compiler_params=pltpu.CompilerParams(
            dimension_semantics=("parallel",),
            vmem_limit_bytes=32 * 1024 * 1024),
    )(xk, t1, b1, t2, b2, fw1, fb1, fw2, fb2, fw3, fb3)

    return out[:B]


# ----------------------------------------------------------------------------
# Deterministic parameter init (same shapes as the torch module)
# ----------------------------------------------------------------------------
def init_params(key, output_dim):
    keys = jax.random.split(key, 10)

    def uni(k, shape, fan_in):
        b = 1.0 / math.sqrt(fan_in)
        return jax.random.uniform(k, shape, jnp.float32, -b, b)

    return {
        "conv1_w": uni(keys[0], (6, 1, 5, 5), 25),
        "conv1_b": uni(keys[1], (6,), 25),
        "conv2_w": uni(keys[2], (16, 6, 5, 5), 150),
        "conv2_b": uni(keys[3], (16,), 150),
        "fc1_w": uni(keys[4], (16 * 4 * 4, 120), 256),
        "fc1_b": uni(keys[5], (120,), 256),
        "fc2_w": uni(keys[6], (120, 84), 120),
        "fc2_b": uni(keys[7], (84,), 120),
        "fc3_w": uni(keys[8], (84, output_dim), 84),
        "fc3_b": uni(keys[9], (output_dim,), 84),
    }


# ----------------------------------------------------------------------------
# Pure-JAX reference (mirrors the torch forward) for cross-checking
# ----------------------------------------------------------------------------
def lenet_reference(x, params):
    dn = ("NCHW", "OIHW", "NCHW")
    y = lax.conv_general_dilated(x, params["conv1_w"], (1, 1), "VALID",
                                 dimension_numbers=dn)
    y = y + params["conv1_b"][None, :, None, None]
    y = lax.reduce_window(y, -jnp.inf, lax.max, (1, 1, 2, 2), (1, 1, 2, 2),
                          "VALID")
    y = jnp.maximum(y, 0.0)
    y = lax.conv_general_dilated(y, params["conv2_w"], (1, 1), "VALID",
                                 dimension_numbers=dn)
    y = y + params["conv2_b"][None, :, None, None]
    y = lax.reduce_window(y, -jnp.inf, lax.max, (1, 1, 2, 2), (1, 1, 2, 2),
                          "VALID")
    y = jnp.maximum(y, 0.0)
    y = y.reshape(y.shape[0], -1)
    y = jnp.maximum(y @ params["fc1_w"] + params["fc1_b"], 0.0)
    y = jnp.maximum(y @ params["fc2_w"] + params["fc2_b"], 0.0)
    return y @ params["fc3_w"] + params["fc3_b"]


if __name__ == "__main__":
    key = jax.random.PRNGKey(0)
    pkey, xkey = jax.random.split(key)
    output_dim = 10
    params = init_params(pkey, output_dim)

    # LeNet's 16*4*4 flatten implies 28x28 inputs; small batch for the check.
    x = jax.random.normal(xkey, (2, 1, 28, 28), jnp.float32)

    out = jax.block_until_ready(jax.jit(lenet_forward)(x, params))

    ref = lenet_reference(x, params)
    assert out.shape == (2, output_dim)
    max_err = jnp.max(jnp.abs(out - ref))
    # bf16 matmul operands -> ~1e-2-scale tolerance (f32 accumulation).
    assert jnp.allclose(out, ref, atol=5e-2, rtol=5e-2), (max_err, out, ref)
    print("KERNEL_OK")
</pallas_src>

<mosaic_0001>
module attributes {stable_mosaic.version = 11 : i64} {
  func.func @lenet_kernel(%arg0: i32, %arg1: memref<28x8x28xbf16, #tpu.memory_space<vmem>>, %arg2: memref<2x5x28x72xbf16, #tpu.memory_space<vmem>>, %arg3: memref<1x72xf32, #tpu.memory_space<vmem>>, %arg4: memref<2x5x72x64xbf16, #tpu.memory_space<vmem>>, %arg5: memref<1x64xf32, #tpu.memory_space<vmem>>, %arg6: memref<256x120xbf16, #tpu.memory_space<vmem>>, %arg7: memref<1x120xf32, #tpu.memory_space<vmem>>, %arg8: memref<120x84xbf16, #tpu.memory_space<vmem>>, %arg9: memref<1x84xf32, #tpu.memory_space<vmem>>, %arg10: memref<84x10xbf16, #tpu.memory_space<vmem>>, %arg11: memref<1x10xf32, #tpu.memory_space<vmem>>, %arg12: memref<8x10xf32, #tpu.memory_space<vmem>>) attributes {dimension_semantics = [#tpu.dimension_semantics<parallel>], iteration_bounds = array<i64: 1>, scalar_prefetch = 0 : i64, scratch_operands = 0 : i64, tpu.core_type = #tpu.core_type<tc>, window_params = [{transform_indices = @transform_0, window_bounds = array<i64: 28, 8, 28>}, {pipeline_mode = #tpu.pipeline_mode<synchronous>, transform_indices = @transform_1, window_bounds = array<i64: 2, 5, 28, 72>}, {pipeline_mode = #tpu.pipeline_mode<synchronous>, transform_indices = @transform_2, window_bounds = array<i64: 1, 72>}, {pipeline_mode = #tpu.pipeline_mode<synchronous>, transform_indices = @transform_3, window_bounds = array<i64: 2, 5, 72, 64>}, {pipeline_mode = #tpu.pipeline_mode<synchronous>, transform_indices = @transform_4, window_bounds = array<i64: 1, 64>}, {pipeline_mode = #tpu.pipeline_mode<synchronous>, transform_indices = @transform_5, window_bounds = array<i64: 256, 120>}, {pipeline_mode = #tpu.pipeline_mode<synchronous>, transform_indices = @transform_6, window_bounds = array<i64: 1, 120>}, {pipeline_mode = #tpu.pipeline_mode<synchronous>, transform_indices = @transform_7, window_bounds = array<i64: 120, 84>}, {pipeline_mode = #tpu.pipeline_mode<synchronous>, transform_indices = @transform_8, window_bounds = array<i64: 1, 84>}, {pipeline_mode = #tpu.pipeline_mode<synchronous>, transform_indices = @transform_9, window_bounds = array<i64: 84, 10>}, {pipeline_mode = #tpu.pipeline_mode<synchronous>, transform_indices = @transform_10, window_bounds = array<i64: 1, 10>}, {transform_indices = @transform_11, window_bounds = array<i64: 8, 10>}]} {
    %c0 = arith.constant 0 : index
    %c0_0 = arith.constant 0 : index
    %c0_1 = arith.constant 0 : index
    %0 = vector.load %arg1[%c0, %c0_0, %c0_1] : memref<28x8x28xbf16, #tpu.memory_space<vmem>>, vector<28x8x28xbf16>
    %c0_2 = arith.constant 0 : index
    %c0_3 = arith.constant 0 : index
    %c0_4 = arith.constant 0 : index
    %c0_5 = arith.constant 0 : index
    %1 = vector.load %arg2[%c0_2, %c0_3, %c0_4, %c0_5] : memref<2x5x28x72xbf16, #tpu.memory_space<vmem>>, vector<2x5x28x72xbf16>
    %c0_6 = arith.constant 0 : index
    %c0_7 = arith.constant 0 : index
    %c0_8 = arith.constant 0 : index
    %c0_9 = arith.constant 0 : index
    %2 = vector.load %arg4[%c0_6, %c0_7, %c0_8, %c0_9] : memref<2x5x72x64xbf16, #tpu.memory_space<vmem>>, vector<2x5x72x64xbf16>
    %cst = arith.constant 0.000000e+00 : f32
    %3 = vector.broadcast %cst : f32 to vector<192x72xf32>
    %cst_10 = arith.constant 0.000000e+00 : f32
    %4 = vector.broadcast %cst_10 : f32 to vector<192x72xf32>
    %5 = vector.extract_strided_slice %0 {offsets = [0, 0, 0], sizes = [24, 8, 28], strides = [1, 1, 1]} : vector<28x8x28xbf16> to vector<24x8x28xbf16>
    %6 = vector.shape_cast %5 : vector<24x8x28xbf16> to vector<192x28xbf16>
    %7 = vector.extract_strided_slice %1 {offsets = [0, 0, 0, 0], sizes = [1, 1, 28, 72], strides = [1, 1, 1, 1]} : vector<2x5x28x72xbf16> to vector<1x1x28x72xbf16>
    %8 = vector.shape_cast %7 : vector<1x1x28x72xbf16> to vector<28x72xbf16>
    %cst_11 = arith.constant dense<0.000000e+00> : vector<192x72xf32>
    %9 = tpu.matmul %6, %8, %cst_11 {dimension_numbers = #tpu.dot_dimension_numbers<[1], [0], [0], [1], [0, 0, 1, 1], [], []>} : vector<192x28xbf16>, vector<28x72xbf16>, vector<192x72xf32> -> vector<192x72xf32>
    %10 = arith.addf %3, %9 : vector<192x72xf32>
    %11 = vector.extract_strided_slice %1 {offsets = [1, 0, 0, 0], sizes = [1, 1, 28, 72], strides = [1, 1, 1, 1]} : vector<2x5x28x72xbf16> to vector<1x1x28x72xbf16>
    %12 = vector.shape_cast %11 : vector<1x1x28x72xbf16> to vector<28x72xbf16>
    %cst_12 = arith.constant dense<0.000000e+00> : vector<192x72xf32>
    %13 = tpu.matmul %6, %12, %cst_12 {dimension_numbers = #tpu.dot_dimension_numbers<[1], [0], [0], [1], [0, 0, 1, 1], [], []>} : vector<192x28xbf16>, vector<28x72xbf16>, vector<192x72xf32> -> vector<192x72xf32>
    %14 = arith.addf %4, %13 : vector<192x72xf32>
    %15 = vector.extract_strided_slice %0 {offsets = [1, 0, 0], sizes = [24, 8, 28], strides = [1, 1, 1]} : vector<28x8x28xbf16> to vector<24x8x28xbf16>
    %16 = vector.shape_cast %15 : vector<24x8x28xbf16> to vector<192x28xbf16>
    %17 = vector.extract_strided_slice %1 {offsets = [0, 1, 0, 0], sizes = [1, 1, 28, 72], strides = [1, 1, 1, 1]} : vector<2x5x28x72xbf16> to vector<1x1x28x72xbf16>
    %18 = vector.shape_cast %17 : vector<1x1x28x72xbf16> to vector<28x72xbf16>
    %cst_13 = arith.constant dense<0.000000e+00> : vector<192x72xf32>
    %19 = tpu.matmul %16, %18, %cst_13 {dimension_numbers = #tpu.dot_dimension_numbers<[1], [0], [0], [1], [0, 0, 1, 1], [], []>} : vector<192x28xbf16>, vector<28x72xbf16>, vector<192x72xf32> -> vector<192x72xf32>
    %20 = arith.addf %10, %19 : vector<192x72xf32>
    %21 = vector.extract_strided_slice %1 {offsets = [1, 1, 0, 0], sizes = [1, 1, 28, 72], strides = [1, 1, 1, 1]} : vector<2x5x28x72xbf16> to vector<1x1x28x72xbf16>
    %22 = vector.shape_cast %21 : vector<1x1x28x72xbf16> to vector<28x72xbf16>
    %cst_14 = arith.constant dense<0.000000e+00> : vector<192x72xf32>
    %23 = tpu.matmul %16, %22, %cst_14 {dimension_numbers = #tpu.dot_dimension_numbers<[1], [0], [0], [1], [0, 0, 1, 1], [], []>} : vector<192x28xbf16>, vector<28x72xbf16>, vector<192x72xf32> -> vector<192x72xf32>
    %24 = arith.addf %14, %23 : vector<192x72xf32>
    %25 = vector.extract_strided_slice %0 {offsets = [2, 0, 0], sizes = [24, 8, 28], strides = [1, 1, 1]} : vector<28x8x28xbf16> to vector<24x8x28xbf16>
    %26 = vector.shape_cast %25 : vector<24x8x28xbf16> to vector<192x28xbf16>
    %27 = vector.extract_strided_slice %1 {offsets = [0, 2, 0, 0], sizes = [1, 1, 28, 72], strides = [1, 1, 1, 1]} : vector<2x5x28x72xbf16> to vector<1x1x28x72xbf16>
    %28 = vector.shape_cast %27 : vector<1x1x28x72xbf16> to vector<28x72xbf16>
    %cst_15 = arith.constant dense<0.000000e+00> : vector<192x72xf32>
    %29 = tpu.matmul %26, %28, %cst_15 {dimension_numbers = #tpu.dot_dimension_numbers<[1], [0], [0], [1], [0, 0, 1, 1], [], []>} : vector<192x28xbf16>, vector<28x72xbf16>, vector<192x72xf32> -> vector<192x72xf32>
    %30 = arith.addf %20, %29 : vector<192x72xf32>
    %31 = vector.extract_strided_slice %1 {offsets = [1, 2, 0, 0], sizes = [1, 1, 28, 72], strides = [1, 1, 1, 1]} : vector<2x5x28x72xbf16> to vector<1x1x28x72xbf16>
    %32 = vector.shape_cast %31 : vector<1x1x28x72xbf16> to vector<28x72xbf16>
    %cst_16 = arith.constant dense<0.000000e+00> : vector<192x72xf32>
    %33 = tpu.matmul %26, %32, %cst_16 {dimension_numbers = #tpu.dot_dimension_numbers<[1], [0], [0], [1], [0, 0, 1, 1], [], []>} : vector<192x28xbf16>, vector<28x72xbf16>, vector<192x72xf32> -> vector<192x72xf32>
    %34 = arith.addf %24, %33 : vector<192x72xf32>
    %35 = vector.extract_strided_slice %0 {offsets = [3, 0, 0], sizes = [24, 8, 28], strides = [1, 1, 1]} : vector<28x8x28xbf16> to vector<24x8x28xbf16>
    %36 = vector.shape_cast %35 : vector<24x8x28xbf16> to vector<192x28xbf16>
    %37 = vector.extract_strided_slice %1 {offsets = [0, 3, 0, 0], sizes = [1, 1, 28, 72], strides = [1, 1, 1, 1]} : vector<2x5x28x72xbf16> to vector<1x1x28x72xbf16>
    %38 = vector.shape_cast %37 : vector<1x1x28x72xbf16> to vector<28x72xbf16>
    %cst_17 = arith.constant dense<0.000000e+00> : vector<192x72xf32>
    %39 = tpu.matmul %36, %38, %cst_17 {dimension_numbers = #tpu.dot_dimension_numbers<[1], [0], [0], [1], [0, 0, 1, 1], [], []>} : vector<192x28xbf16>, vector<28x72xbf16>, vector<192x72xf32> -> vector<192x72xf32>
    %40 = arith.addf %30, %39 : vector<192x72xf32>
    %41 = vector.extract_strided_slice %1 {offsets = [1, 3, 0, 0], sizes = [1, 1, 28, 72], strides = [1, 1, 1, 1]} : vector<2x5x28x72xbf16> to vector<1x1x28x72xbf16>
    %42 = vector.shape_cast %41 : vector<1x1x28x72xbf16> to vector<28x72xbf16>
    %cst_18 = arith.constant dense<0.000000e+00> : vector<192x72xf32>
    %43 = tpu.matmul %36, %42, %cst_18 {dimension_numbers = #tpu.dot_dimension_numbers<[1], [0], [0], [1], [0, 0, 1, 1], [], []>} : vector<192x28xbf16>, vector<28x72xbf16>, vector<192x72xf32> -> vector<192x72xf32>
    %44 = arith.addf %34, %43 : vector<192x72xf32>
    %45 = vector.extract_strided_slice %0 {offsets = [4, 0, 0], sizes = [24, 8, 28], strides = [1, 1, 1]} : vector<28x8x28xbf16> to vector<24x8x28xbf16>
    %46 = vector.shape_cast %45 : vector<24x8x28xbf16> to vector<192x28xbf16>
    %47 = vector.extract_strided_slice %1 {offsets = [0, 4, 0, 0], sizes = [1, 1, 28, 72], strides = [1, 1, 1, 1]} : vector<2x5x28x72xbf16> to vector<1x1x28x72xbf16>
    %48 = vector.shape_cast %47 : vector<1x1x28x72xbf16> to vector<28x72xbf16>
    %cst_19 = arith.constant dense<0.000000e+00> : vector<192x72xf32>
    %49 = tpu.matmul %46, %48, %cst_19 {dimension_numbers = #tpu.dot_dimension_numbers<[1], [0], [0], [1], [0, 0, 1, 1], [], []>} : vector<192x28xbf16>, vector<28x72xbf16>, vector<192x72xf32> -> vector<192x72xf32>
    %50 = arith.addf %40, %49 : vector<192x72xf32>
    %51 = vector.extract_strided_slice %1 {offsets = [1, 4, 0, 0], sizes = [1, 1, 28, 72], strides = [1, 1, 1, 1]} : vector<2x5x28x72xbf16> to vector<1x1x28x72xbf16>
    %52 = vector.shape_cast %51 : vector<1x1x28x72xbf16> to vector<28x72xbf16>
    %cst_20 = arith.constant dense<0.000000e+00> : vector<192x72xf32>
    %53 = tpu.matmul %46, %52, %cst_20 {dimension_numbers = #tpu.dot_dimension_numbers<[1], [0], [0], [1], [0, 0, 1, 1], [], []>} : vector<192x28xbf16>, vector<28x72xbf16>, vector<192x72xf32> -> vector<192x72xf32>
    %54 = arith.addf %44, %53 : vector<192x72xf32>
    %55 = vector.shape_cast %50 : vector<192x72xf32> to vector<12x2x8x72xf32>
    %56 = vector.shape_cast %54 : vector<192x72xf32> to vector<12x2x8x72xf32>
    %57 = vector.extract_strided_slice %55 {offsets = [0, 0, 0, 0], sizes = [12, 1, 8, 72], strides = [1, 1, 1, 1]} : vector<12x2x8x72xf32> to vector<12x1x8x72xf32>
    %58 = vector.shape_cast %57 : vector<12x1x8x72xf32> to vector<12x8x72xf32>
    %59 = vector.extract_strided_slice %55 {offsets = [0, 1, 0, 0], sizes = [12, 1, 8, 72], strides = [1, 1, 1, 1]} : vector<12x2x8x72xf32> to vector<12x1x8x72xf32>
    %60 = vector.shape_cast %59 : vector<12x1x8x72xf32> to vector<12x8x72xf32>
    %61 = arith.maximumf %58, %60 : vector<12x8x72xf32>
    %62 = vector.extract_strided_slice %56 {offsets = [0, 0, 0, 0], sizes = [12, 1, 8, 72], strides = [1, 1, 1, 1]} : vector<12x2x8x72xf32> to vector<12x1x8x72xf32>
    %63 = vector.shape_cast %62 : vector<12x1x8x72xf32> to vector<12x8x72xf32>
    %64 = vector.extract_strided_slice %56 {offsets = [0, 1, 0, 0], sizes = [12, 1, 8, 72], strides = [1, 1, 1, 1]} : vector<12x2x8x72xf32> to vector<12x1x8x72xf32>
    %65 = vector.shape_cast %64 : vector<12x1x8x72xf32> to vector<12x8x72xf32>
    %66 = arith.maximumf %63, %65 : vector<12x8x72xf32>
    %67 = arith.maximumf %61, %66 : vector<12x8x72xf32>
    %c0_21 = arith.constant 0 : index
    %c0_22 = arith.constant 0 : index
    %68 = vector.load %arg3[%c0_21, %c0_22] : memref<1x72xf32, #tpu.memory_space<vmem>>, vector<1x72xf32>
    %69 = vector.shape_cast %68 : vector<1x72xf32> to vector<1x1x72xf32>
    %70 = vector.broadcast %69 : vector<1x1x72xf32> to vector<12x8x72xf32>
    %71 = arith.addf %67, %70 : vector<12x8x72xf32>
    %cst_23 = arith.constant 0.000000e+00 : f32
    %72 = vector.broadcast %cst_23 : f32 to vector<12x8x72xf32>
    %73 = arith.maximumf %71, %72 : vector<12x8x72xf32>
    %74 = arith.truncf %73 : vector<12x8x72xf32> to vector<12x8x72xbf16>
    %cst_24 = arith.constant 0.000000e+00 : f32
    %75 = vector.broadcast %cst_24 : f32 to vector<64x64xf32>
    %cst_25 = arith.constant 0.000000e+00 : f32
    %76 = vector.broadcast %cst_25 : f32 to vector<64x64xf32>
    %77 = vector.extract_strided_slice %74 {offsets = [0, 0, 0], sizes = [8, 8, 72], strides = [1, 1, 1]} : vector<12x8x72xbf16> to vector<8x8x72xbf16>
    %78 = vector.shape_cast %77 : vector<8x8x72xbf16> to vector<64x72xbf16>
    %79 = vector.extract_strided_slice %2 {offsets = [0, 0, 0, 0], sizes = [1, 1, 72, 64], strides = [1, 1, 1, 1]} : vector<2x5x72x64xbf16> to vector<1x1x72x64xbf16>
    %80 = vector.shape_cast %79 : vector<1x1x72x64xbf16> to vector<72x64xbf16>
    %cst_26 = arith.constant dense<0.000000e+00> : vector<64x64xf32>
    %81 = tpu.matmul %78, %80, %cst_26 {dimension_numbers = #tpu.dot_dimension_numbers<[1], [0], [0], [1], [0, 0, 1, 1], [], []>} : vector<64x72xbf16>, vector<72x64xbf16>, vector<64x64xf32> -> vector<64x64xf32>
    %82 = arith.addf %75, %81 : vector<64x64xf32>
    %83 = vector.extract_strided_slice %2 {offsets = [1, 0, 0, 0], sizes = [1, 1, 72, 64], strides = [1, 1, 1, 1]} : vector<2x5x72x64xbf16> to vector<1x1x72x64xbf16>
    %84 = vector.shape_cast %83 : vector<1x1x72x64xbf16> to vector<72x64xbf16>
    %cst_27 = arith.constant dense<0.000000e+00> : vector<64x64xf32>
    %85 = tpu.matmul %78, %84, %cst_27 {dimension_numbers = #tpu.dot_dimension_numbers<[1], [0], [0], [1], [0, 0, 1, 1], [], []>} : vector<64x72xbf16>, vector<72x64xbf16>, vector<64x64xf32> -> vector<64x64xf32>
    %86 = arith.addf %76, %85 : vector<64x64xf32>
    %87 = vector.extract_strided_slice %74 {offsets = [1, 0, 0], sizes = [8, 8, 72], strides = [1, 1, 1]} : vector<12x8x72xbf16> to vector<8x8x72xbf16>
    %88 = vector.shape_cast %87 : vector<8x8x72xbf16> to vector<64x72xbf16>
    %89 = vector.extract_strided_slice %2 {offsets = [0, 1, 0, 0], sizes = [1, 1, 72, 64], strides = [1, 1, 1, 1]} : vector<2x5x72x64xbf16> to vector<1x1x72x64xbf16>
    %90 = vector.shape_cast %89 : vector<1x1x72x64xbf16> to vector<72x64xbf16>
    %cst_28 = arith.constant dense<0.000000e+00> : vector<64x64xf32>
    %91 = tpu.matmul %88, %90, %cst_28 {dimension_numbers = #tpu.dot_dimension_numbers<[1], [0], [0], [1], [0, 0, 1, 1], [], []>} : vector<64x72xbf16>, vector<72x64xbf16>, vector<64x64xf32> -> vector<64x64xf32>
    %92 = arith.addf %82, %91 : vector<64x64xf32>
    %93 = vector.extract_strided_slice %2 {offsets = [1, 1, 0, 0], sizes = [1, 1, 72, 64], strides = [1, 1, 1, 1]} : vector<2x5x72x64xbf16> to vector<1x1x72x64xbf16>
    %94 = vector.shape_cast %93 : vector<1x1x72x64xbf16> to vector<72x64xbf16>
    %cst_29 = arith.constant dense<0.000000e+00> : vector<64x64xf32>
    %95 = tpu.matmul %88, %94, %cst_29 {dimension_numbers = #tpu.dot_dimension_numbers<[1], [0], [0], [1], [0, 0, 1, 1], [], []>} : vector<64x72xbf16>, vector<72x64xbf16>, vector<64x64xf32> -> vector<64x64xf32>
    %96 = arith.addf %86, %95 : vector<64x64xf32>
    %97 = vector.extract_strided_slice %74 {offsets = [2, 0, 0], sizes = [8, 8, 72], strides = [1, 1, 1]} : vector<12x8x72xbf16> to vector<8x8x72xbf16>
    %98 = vector.shape_cast %97 : vector<8x8x72xbf16> to vector<64x72xbf16>
    %99 = vector.extract_strided_slice %2 {offsets = [0, 2, 0, 0], sizes = [1, 1, 72, 64], strides = [1, 1, 1, 1]} : vector<2x5x72x64xbf16> to vector<1x1x72x64xbf16>
    %100 = vector.shape_cast %99 : vector<1x1x72x64xbf16> to vector<72x64xbf16>
    %cst_30 = arith.constant dense<0.000000e+00> : vector<64x64xf32>
    %101 = tpu.matmul %98, %100, %cst_30 {dimension_numbers = #tpu.dot_dimension_numbers<[1], [0], [0], [1], [0, 0, 1, 1], [], []>} : vector<64x72xbf16>, vector<72x64xbf16>, vector<64x64xf32> -> vector<64x64xf32>
    %102 = arith.addf %92, %101 : vector<64x64xf32>
    %103 = vector.extract_strided_slice %2 {offsets = [1, 2, 0, 0], sizes = [1, 1, 72, 64], strides = [1, 1, 1, 1]} : vector<2x5x72x64xbf16> to vector<1x1x72x64xbf16>
    %104 = vector.shape_cast %103 : vector<1x1x72x64xbf16> to vector<72x64xbf16>
    %cst_31 = arith.constant dense<0.000000e+00> : vector<64x64xf32>
    %105 = tpu.matmul %98, %104, %cst_31 {dimension_numbers = #tpu.dot_dimension_numbers<[1], [0], [0], [1], [0, 0, 1, 1], [], []>} : vector<64x72xbf16>, vector<72x64xbf16>, vector<64x64xf32> -> vector<64x64xf32>
    %106 = arith.addf %96, %105 : vector<64x64xf32>
    %107 = vector.extract_strided_slice %74 {offsets = [3, 0, 0], sizes = [8, 8, 72], strides = [1, 1, 1]} : vector<12x8x72xbf16> to vector<8x8x72xbf16>
    %108 = vector.shape_cast %107 : vector<8x8x72xbf16> to vector<64x72xbf16>
    %109 = vector.extract_strided_slice %2 {offsets = [0, 3, 0, 0], sizes = [1, 1, 72, 64], strides = [1, 1, 1, 1]} : vector<2x5x72x64xbf16> to vector<1x1x72x64xbf16>
    %110 = vector.shape_cast %109 : vector<1x1x72x64xbf16> to vector<72x64xbf16>
    %cst_32 = arith.constant dense<0.000000e+00> : vector<64x64xf32>
    %111 = tpu.matmul %108, %110, %cst_32 {dimension_numbers = #tpu.dot_dimension_numbers<[1], [0], [0], [1], [0, 0, 1, 1], [], []>} : vector<64x72xbf16>, vector<72x64xbf16>, vector<64x64xf32> -> vector<64x64xf32>
    %112 = arith.addf %102, %111 : vector<64x64xf32>
    %113 = vector.extract_strided_slice %2 {offsets = [1, 3, 0, 0], sizes = [1, 1, 72, 64], strides = [1, 1, 1, 1]} : vector<2x5x72x64xbf16> to vector<1x1x72x64xbf16>
    %114 = vector.shape_cast %113 : vector<1x1x72x64xbf16> to vector<72x64xbf16>
    %cst_33 = arith.constant dense<0.000000e+00> : vector<64x64xf32>
    %115 = tpu.matmul %108, %114, %cst_33 {dimension_numbers = #tpu.dot_dimension_numbers<[1], [0], [0], [1], [0, 0, 1, 1], [], []>} : vector<64x72xbf16>, vector<72x64xbf16>, vector<64x64xf32> -> vector<64x64xf32>
    %116 = arith.addf %106, %115 : vector<64x64xf32>
    %117 = vector.extract_strided_slice %74 {offsets = [4, 0, 0], sizes = [8, 8, 72], strides = [1, 1, 1]} : vector<12x8x72xbf16> to vector<8x8x72xbf16>
    %118 = vector.shape_cast %117 : vector<8x8x72xbf16> to vector<64x72xbf16>
    %119 = vector.extract_strided_slice %2 {offsets = [0, 4, 0, 0], sizes = [1, 1, 72, 64], strides = [1, 1, 1, 1]} : vector<2x5x72x64xbf16> to vector<1x1x72x64xbf16>
    %120 = vector.shape_cast %119 : vector<1x1x72x64xbf16> to vector<72x64xbf16>
    %cst_34 = arith.constant dense<0.000000e+00> : vector<64x64xf32>
    %121 = tpu.matmul %118, %120, %cst_34 {dimension_numbers = #tpu.dot_dimension_numbers<[1], [0], [0], [1], [0, 0, 1, 1], [], []>} : vector<64x72xbf16>, vector<72x64xbf16>, vector<64x64xf32> -> vector<64x64xf32>
    %122 = arith.addf %112, %121 : vector<64x64xf32>
    %123 = vector.extract_strided_slice %2 {offsets = [1, 4, 0, 0], sizes = [1, 1, 72, 64], strides = [1, 1, 1, 1]} : vector<2x5x72x64xbf16> to vector<1x1x72x64xbf16>
    %124 = vector.shape_cast %123 : vector<1x1x72x64xbf16> to vector<72x64xbf16>
    %cst_35 = arith.constant dense<0.000000e+00> : vector<64x64xf32>
    %125 = tpu.matmul %118, %124, %cst_35 {dimension_numbers = #tpu.dot_dimension_numbers<[1], [0], [0], [1], [0, 0, 1, 1], [], []>} : vector<64x72xbf16>, vector<72x64xbf16>, vector<64x64xf32> -> vector<64x64xf32>
    %126 = arith.addf %116, %125 : vector<64x64xf32>
    %127 = vector.shape_cast %122 : vector<64x64xf32> to vector<4x2x8x64xf32>
    %128 = vector.shape_cast %126 : vector<64x64xf32> to vector<4x2x8x64xf32>
    %129 = vector.extract_strided_slice %127 {offsets = [0, 0, 0, 0], sizes = [4, 1, 8, 64], strides = [1, 1, 1, 1]} : vector<4x2x8x64xf32> to vector<4x1x8x64xf32>
    %130 = vector.shape_cast %129 : vector<4x1x8x64xf32> to vector<4x8x64xf32>
    %131 = vector.extract_strided_slice %127 {offsets = [0, 1, 0, 0], sizes = [4, 1, 8, 64], strides = [1, 1, 1, 1]} : vector<4x2x8x64xf32> to vector<4x1x8x64xf32>
    %132 = vector.shape_cast %131 : vector<4x1x8x64xf32> to vector<4x8x64xf32>
    %133 = arith.maximumf %130, %132 : vector<4x8x64xf32>
    %134 = vector.extract_strided_slice %128 {offsets = [0, 0, 0, 0], sizes = [4, 1, 8, 64], strides = [1, 1, 1, 1]} : vector<4x2x8x64xf32> to vector<4x1x8x64xf32>
    %135 = vector.shape_cast %134 : vector<4x1x8x64xf32> to vector<4x8x64xf32>
    %136 = vector.extract_strided_slice %128 {offsets = [0, 1, 0, 0], sizes = [4, 1, 8, 64], strides = [1, 1, 1, 1]} : vector<4x2x8x64xf32> to vector<4x1x8x64xf32>
    %137 = vector.shape_cast %136 : vector<4x1x8x64xf32> to vector<4x8x64xf32>
    %138 = arith.maximumf %135, %137 : vector<4x8x64xf32>
    %139 = arith.maximumf %133, %138 : vector<4x8x64xf32>
    %c0_36 = arith.constant 0 : index
    %c0_37 = arith.constant 0 : index
    %140 = vector.load %arg5[%c0_36, %c0_37] : memref<1x64xf32, #tpu.memory_space<vmem>>, vector<1x64xf32>
    %141 = vector.shape_cast %140 : vector<1x64xf32> to vector<1x1x64xf32>
    %142 = vector.broadcast %141 : vector<1x1x64xf32> to vector<4x8x64xf32>
    %143 = arith.addf %139, %142 : vector<4x8x64xf32>
    %cst_38 = arith.constant 0.000000e+00 : f32
    %144 = vector.broadcast %cst_38 : f32 to vector<4x8x64xf32>
    %145 = arith.maximumf %143, %144 : vector<4x8x64xf32>
    %146 = arith.truncf %145 : vector<4x8x64xf32> to vector<4x8x64xbf16>
    %147 = vector.extract_strided_slice %146 {offsets = [0, 0, 0], sizes = [1, 8, 64], strides = [1, 1, 1]} : vector<4x8x64xbf16> to vector<1x8x64xbf16>
    %148 = vector.shape_cast %147 : vector<1x8x64xbf16> to vector<8x64xbf16>
    %149 = vector.extract_strided_slice %146 {offsets = [1, 0, 0], sizes = [1, 8, 64], strides = [1, 1, 1]} : vector<4x8x64xbf16> to vector<1x8x64xbf16>
    %150 = vector.shape_cast %149 : vector<1x8x64xbf16> to vector<8x64xbf16>
    %151 = vector.extract_strided_slice %146 {offsets = [2, 0, 0], sizes = [1, 8, 64], strides = [1, 1, 1]} : vector<4x8x64xbf16> to vector<1x8x64xbf16>
    %152 = vector.shape_cast %151 : vector<1x8x64xbf16> to vector<8x64xbf16>
    %153 = vector.extract_strided_slice %146 {offsets = [3, 0, 0], sizes = [1, 8, 64], strides = [1, 1, 1]} : vector<4x8x64xbf16> to vector<1x8x64xbf16>
    %154 = vector.shape_cast %153 : vector<1x8x64xbf16> to vector<8x64xbf16>
    %155 = tpu.concatenate %148, %150, %152, %154 in 1 : vector<8x64xbf16>, vector<8x64xbf16>, vector<8x64xbf16>, vector<8x64xbf16> -> vector<8x256xbf16>
    %c0_39 = arith.constant 0 : index
    %c0_40 = arith.constant 0 : index
    %156 = vector.load %arg6[%c0_39, %c0_40] : memref<256x120xbf16, #tpu.memory_space<vmem>>, vector<256x120xbf16>
    %cst_41 = arith.constant dense<0.000000e+00> : vector<8x120xf32>
    %157 = tpu.matmul %155, %156, %cst_41 {dimension_numbers = #tpu.dot_dimension_numbers<[1], [0], [0], [1], [0, 0, 1, 1], [], []>} : vector<8x256xbf16>, vector<256x120xbf16>, vector<8x120xf32> -> vector<8x120xf32>
    %c0_42 = arith.constant 0 : index
    %c0_43 = arith.constant 0 : index
    %158 = vector.load %arg7[%c0_42, %c0_43] : memref<1x120xf32, #tpu.memory_space<vmem>>, vector<1x120xf32>
    %159 = vector.broadcast %158 : vector<1x120xf32> to vector<8x120xf32>
    %160 = arith.addf %157, %159 : vector<8x120xf32>
    %cst_44 = arith.constant 0.000000e+00 : f32
    %161 = vector.broadcast %cst_44 : f32 to vector<8x120xf32>
    %162 = arith.maximumf %160, %161 : vector<8x120xf32>
    %163 = arith.truncf %162 : vector<8x120xf32> to vector<8x120xbf16>
    %c0_45 = arith.constant 0 : index
    %c0_46 = arith.constant 0 : index
    %164 = vector.load %arg8[%c0_45, %c0_46] : memref<120x84xbf16, #tpu.memory_space<vmem>>, vector<120x84xbf16>
    %cst_47 = arith.constant dense<0.000000e+00> : vector<8x84xf32>
    %165 = tpu.matmul %163, %164, %cst_47 {dimension_numbers = #tpu.dot_dimension_numbers<[1], [0], [0], [1], [0, 0, 1, 1], [], []>} : vector<8x120xbf16>, vector<120x84xbf16>, vector<8x84xf32> -> vector<8x84xf32>
    %c0_48 = arith.constant 0 : index
    %c0_49 = arith.constant 0 : index
    %166 = vector.load %arg9[%c0_48, %c0_49] : memref<1x84xf32, #tpu.memory_space<vmem>>, vector<1x84xf32>
    %167 = vector.broadcast %166 : vector<1x84xf32> to vector<8x84xf32>
    %168 = arith.addf %165, %167 : vector<8x84xf32>
    %cst_50 = arith.constant 0.000000e+00 : f32
    %169 = vector.broadcast %cst_50 : f32 to vector<8x84xf32>
    %170 = arith.maximumf %168, %169 : vector<8x84xf32>
    %171 = arith.truncf %170 : vector<8x84xf32> to vector<8x84xbf16>
    %c0_51 = arith.constant 0 : index
    %c0_52 = arith.constant 0 : index
    %172 = vector.load %arg10[%c0_51, %c0_52] : memref<84x10xbf16, #tpu.memory_space<vmem>>, vector<84x10xbf16>
    %cst_53 = arith.constant dense<0.000000e+00> : vector<8x10xf32>
    %173 = tpu.matmul %171, %172, %cst_53 {dimension_numbers = #tpu.dot_dimension_numbers<[1], [0], [0], [1], [0, 0, 1, 1], [], []>} : vector<8x84xbf16>, vector<84x10xbf16>, vector<8x10xf32> -> vector<8x10xf32>
    %c0_54 = arith.constant 0 : index
    %c0_55 = arith.constant 0 : index
    %174 = vector.load %arg11[%c0_54, %c0_55] : memref<1x10xf32, #tpu.memory_space<vmem>>, vector<1x10xf32>
    %175 = vector.broadcast %174 : vector<1x10xf32> to vector<8x10xf32>
    %176 = arith.addf %173, %175 : vector<8x10xf32>
    %c0_56 = arith.constant 0 : index
    %c0_57 = arith.constant 0 : index
    %177 = vector.load %arg12[%c0_56, %c0_57] : memref<8x10xf32, #tpu.memory_space<vmem>>, vector<8x10xf32>
    tpu.vector_store %arg12[%c0_56, %c0_57], %176 {strides = array<i32>} : memref<8x10xf32, #tpu.memory_space<vmem>>, vector<8x10xf32>,
    return
  }
  func.func @transform_0(%arg0: i32) -> (i32, i32, i32) {
    %c0_i32 = arith.constant 0 : i32
    %c0_i32_0 = arith.constant 0 : i32
    %c0_i32_1 = arith.constant 0 : i32
    return %c0_i32, %arg0, %c0_i32_0 : i32, i32, i32
  }
  func.func @transform_1(%arg0: i32) -> (i32, i32, i32, i32) {
    %c0_i32 = arith.constant 0 : i32
    %c0_i32_0 = arith.constant 0 : i32
    %c0_i32_1 = arith.constant 0 : i32
    %c0_i32_2 = arith.constant 0 : i32
    %c0_i32_3 = arith.constant 0 : i32
    return %c0_i32, %c0_i32_0, %c0_i32_1, %c0_i32_2 : i32, i32, i32, i32
  }
  func.func @transform_2(%arg0: i32) -> (i32, i32) {
    %c0_i32 = arith.constant 0 : i32
    %c0_i32_0 = arith.constant 0 : i32
    %c0_i32_1 = arith.constant 0 : i32
    return %c0_i32, %c0_i32_0 : i32, i32
  }
  func.func @transform_3(%arg0: i32) -> (i32, i32, i32, i32) {
    %c0_i32 = arith.constant 0 : i32
    %c0_i32_0 = arith.constant 0 : i32
    %c0_i32_1 = arith.constant 0 : i32
    %c0_i32_2 = arith.constant 0 : i32
    %c0_i32_3 = arith.constant 0 : i32
    return %c0_i32, %c0_i32_0, %c0_i32_1, %c0_i32_2 : i32, i32, i32, i32
  }
  func.func @transform_4(%arg0: i32) -> (i32, i32) {
    %c0_i32 = arith.constant 0 : i32
    %c0_i32_0 = arith.constant 0 : i32
    %c0_i32_1 = arith.constant 0 : i32
    return %c0_i32, %c0_i32_0 : i32, i32
  }
  func.func @transform_5(%arg0: i32) -> (i32, i32) {
    %c0_i32 = arith.constant 0 : i32
    %c0_i32_0 = arith.constant 0 : i32
    %c0_i32_1 = arith.constant 0 : i32
    return %c0_i32, %c0_i32_0 : i32, i32
  }
  func.func @transform_6(%arg0: i32) -> (i32, i32) {
    %c0_i32 = arith.constant 0 : i32
    %c0_i32_0 = arith.constant 0 : i32
    %c0_i32_1 = arith.constant 0 : i32
    return %c0_i32, %c0_i32_0 : i32, i32
  }
  func.func @transform_7(%arg0: i32) -> (i32, i32) {
    %c0_i32 = arith.constant 0 : i32
    %c0_i32_0 = arith.constant 0 : i32
    %c0_i32_1 = arith.constant 0 : i32
    return %c0_i32, %c0_i32_0 : i32, i32
  }
  func.func @transform_8(%arg0: i32) -> (i32, i32) {
    %c0_i32 = arith.constant 0 : i32
    %c0_i32_0 = arith.constant 0 : i32
    %c0_i32_1 = arith.constant 0 : i32
    return %c0_i32, %c0_i32_0 : i32, i32
  }
  func.func @transform_9(%arg0: i32) -> (i32, i32) {
    %c0_i32 = arith.constant 0 : i32
    %c0_i32_0 = arith.constant 0 : i32
    %c0_i32_1 = arith.constant 0 : i32
    return %c0_i32, %c0_i32_0 : i32, i32
  }
  func.func @transform_10(%arg0: i32) -> (i32, i32) {
    %c0_i32 = arith.constant 0 : i32
    %c0_i32_0 = arith.constant 0 : i32
    %c0_i32_1 = arith.constant 0 : i32
    return %c0_i32, %c0_i32_0 : i32, i32
  }
  func.func @transform_11(%arg0: i32) -> (i32, i32) {
    %c0_i32 = arith.constant 0 : i32
    %c0_i32_0 = arith.constant 0 : i32
    return %arg0, %c0_i32 : i32, i32
  }
}

</mosaic_0001>

<bundles_post_ra>
// kernel: tile.13
= control target key start
LH: loop header
LB: loop body
LE: loop exit
PB: predicated region body
PF: predicated region fallthrough
CT: control target
= control target key end

     0   :  { %s28_s0 = inlined_call_operand.vmem [shape: f32[6], index: 0, kind: input, shape index: {}]   ;;  %s29_s1 = inlined_call_operand.vmem [shape: f32[12,6], index: 1, kind: output, shape index: {}]  }
   0x1   :  { %v4_v0 = vld [vmem:[%s28_s0] ss:$0 sm:$0xff] }
   0x2   :  { %5 = vst [vmem:[%s29_s1] sm:$0xff] %v4_v0  ;;  %8 = vst [vmem:[%s29_s1 + $0x8] sm:$0xff] %v4_v0 }

// kernel: tile.14
= control target key start
LH: loop header
LB: loop body
LE: loop exit
PB: predicated region body
PF: predicated region fallthrough
CT: control target
= control target key end

     0   :  { %s99_s10 = smov 66   ;;  %s100_s11 = smov 54   ;;  %vm3_vm0 = vcmask 48128   ;;  %vm9_vm1 = vcmask 589328   ;;  %vm15_vm2 = vcmask 540128   ;;  %vm21_vm3 = vcmask 490928   ;;  %s159_s0 = inlined_call_operand.vmem [shape: f32[12,6], index: 0, kind: input, shape index: {}]   ;;  %s160_s1 = inlined_call_operand.vmem [shape: f32[1,72], index: 1, kind: output, shape index: {}]  }
   0x1   :  { %v77_v0 = vld [vmem:[%s159_s0 + $0xb] sm:$0x1]   ;;  %v79_v1 = vld [vmem:[%s159_s0 + $0x9] sm:$0x1]   ;;  %v78_v2 = vld [vmem:[%s159_s0 + $0xa] sm:$0x1]  }
   0x2   :  { %7 = vrot.lane.b32.xlu0 %v77_v0, %s99_s10  ;;  %19 = vrot.lane.b32.xlu1 %v79_v1, %s100_s11  ;;  %v80_v3 = vld [vmem:[%s159_s0 + $0x8] sm:$0x1]   ;;  %s101_s16 = smov 60   ;;  %s102_s17 = smov 48   ;;  %v81_v4 = vld [vmem:[%s159_s0 + $0x7] sm:$0x1]  }
   0x3   :  { %v2_v5 = vld [vmem:[%s159_s0] sm:$0x1]   ;;  %v82_v6 = vld [vmem:[%s159_s0 + $0x6] sm:$0x1]   ;;  %s103_s24 = smov 42   ;;  %s104_s25 = smov 36  }
   0x4   :  { %4 = vst.msk [vmem:[#allocation0] sm:$0x1] %vm3_vm0, %v2_v5   ;;  %v83_v7 = vld [vmem:[%s159_s0 + $0x5] sm:$0x1]   ;;  %v84_v8 = vld [vmem:[%s159_s0 + $0x4] sm:$0x1]  }
   0x5   :  { %s105_s30 = smov 30   ;;  %s106_s2 = smov 24   ;;  %v85_v9 = vld [vmem:[%s159_s0 + $0x3] sm:$0x1]   ;;  %v86_v10 = vld [vmem:[%s159_s0 + $0x2] sm:$0x1]  }
   0x6   :  { %13 = vrot.lane.b32.xlu0 %v78_v2, %s101_s16  ;;  %25 = vrot.lane.b32.xlu1 %v80_v3, %s102_s17  ;;  %s107_s7 = smov 18   ;;  %s108_s8 = smov 12   ;;  %v87_v11 = vld [vmem:[%s159_s0 + $0x1] sm:$0x1]   ;;  %vm27_vm4 = vcmask 441728   ;;  %vm33_vm5 = vcmask 392528  }
   0x7   :  { %s109_s0 = smov 6   ;;  %vm39_vm6 = vcmask 343328   ;;  %vm45_vm7 = vcmask 294128   ;;  %vm51_vm8 = vcmask 244928   ;;  %vm57_vm9 = vcmask 195728  }
   0x8   :  { %vm63_vm10 = vcmask 146528   ;;  %vm69_vm11 = vcmask 97328  }
   0xa   :  { %31 = vrot.lane.b32.xlu0 %v81_v4, %s103_s24  ;;  %37 = vrot.lane.b32.xlu1 %v82_v6, %s104_s25 }
   0xe   :  { %43 = vrot.lane.b32.xlu0 %v83_v7, %s105_s30  ;;  %49 = vrot.lane.b32.xlu1 %v84_v8, %s106_s2 }
  0x12   :  { %55 = vrot.lane.b32.xlu0 %v85_v9, %s107_s7  ;;  %61 = vrot.lane.b32.xlu1 %v86_v10, %s108_s8 }
  0x16   :  { %67 = vrot.lane.b32.xlu0 %v87_v11, %s109_s0 }
  0x74   :  { %v8_v12 = vpop.permute.xlu0 %7   ;;  %v20_v13 = vpop.permute.xlu1 %19  }
  0x75   :  { %10 = vst.msk [vmem:[#allocation0] sm:$0x1] %vm9_vm1, %v8_v12  }
  0x78   :  { %v14_v14 = vpop.permute.xlu0 %13   ;;  %v26_v15 = vpop.permute.xlu1 %25  }
  0x79   :  { %16 = vst.msk [vmem:[#allocation0] sm:$0x1] %vm15_vm2, %v14_v14  }
  0x7a   :  { %22 = vst.msk [vmem:[#allocation0] sm:$0x1] %vm21_vm3, %v20_v13  }
  0x7b   :  { %28 = vst.msk [vmem:[#allocation0] sm:$0x1] %vm27_vm4, %v26_v15  }
  0x7c   :  { %v32_v16 = vpop.permute.xlu0 %31   ;;  %v38_v17 = vpop.permute.xlu1 %37  }
  0x7d   :  { %34 = vst.msk [vmem:[#allocation0] sm:$0x1] %vm33_vm5, %v32_v16  }
  0x7e   :  { %40 = vst.msk [vmem:[#allocation0] sm:$0x1] %vm39_vm6, %v38_v17  }
  0x80   :  { %v44_v18 = vpop.permute.xlu0 %43   ;;  %v50_v19 = vpop.permute.xlu1 %49  }
  0x81   :  { %46 = vst.msk [vmem:[#allocation0] sm:$0x1] %vm45_vm7, %v44_v18  }
  0x82   :  { %52 = vst.msk [vmem:[#allocation0] sm:$0x1] %vm51_vm8, %v50_v19  }
  0x84   :  { %v56_v20 = vpop.permute.xlu0 %55   ;;  %v62_v21 = vpop.permute.xlu1 %61  }
  0x85   :  { %58 = vst.msk [vmem:[#allocation0] sm:$0x1] %vm57_vm9, %v56_v20  }
  0x86   :  { %64 = vst.msk [vmem:[#allocation0] sm:$0x1] %vm63_vm10, %v62_v21  }
  0x88   :  { %v68_v22 = vpop.permute.xlu0 %67  }
  0x89   :  { %70 = vst.msk [vmem:[#allocation0] sm:$0x1] %vm69_vm11, %v68_v22  }
  0x90   :  { %v74_v23 = vld [vmem:[#allocation0] sm:$0x1] }
  0x91   :  { %76 = vst [vmem:[%s160_s1] sm:$0x1] %v74_v23 }

// kernel: tile.18
= control target key start
LH: loop header
LB: loop body
LE: loop exit
PB: predicated region body
PF: predicated region fallthrough
CT: control target
= control target key end

     0   :  { %s22_s0 = inlined_call_operand.vmem [shape: f32[16], index: 0, kind: input, shape index: {}]   ;;  %s23_s1 = inlined_call_operand.vmem [shape: f32[4,16], index: 1, kind: output, shape index: {}]  }
   0x1   :  { %v4_v0 = vld [vmem:[%s22_s0] ss:$0 sm:$0xff] }
   0x2   :  { %5 = vst [vmem:[%s23_s1] sm:$0xf] %v4_v0 }

// kernel: tile.19
= control target key start
LH: loop header
LB: loop body
LE: loop exit
PB: predicated region body
PF: predicated region fallthrough
CT: control target
= control target key end

     0   :  { %vm7_vm0 = vcmask 130048   ;;  %s37_s8 = smov 16   ;;  %s38_s9 = smov 32   ;;  %vm13_vm1 = vcmask 523648   ;;  %vm19_vm2 = vcmask 392448   ;;  %vm25_vm3 = vcmask 261248   ;;  %s55_s0 = inlined_call_operand.vmem [shape: f32[4,16], index: 0, kind: input, shape index: {}]   ;;  %s56_s1 = inlined_call_operand.vmem [shape: f32[1,64], index: 1, kind: output, shape index: {}]  }
   0x1   :  { %v4_v0 = vld [vmem:[%s55_s0] sm:$0xf]  ;;  %s36_s0 = smov 48  }
   0x2   :  { %5 = vst [vmem:[#allocation1] sm:$0xf] %v4_v0 }
   0x9   :  { %v10_v1 = vld [vmem:[#allocation1 + $0x3] sm:$0x1]   ;;  %v22_v2 = vld [vmem:[#allocation1 + $0x1] sm:$0x1]   ;;  %v6_v3 = vld [vmem:[#allocation1] sm:$0x1]  }
   0xa   :  { %11 = vrot.lane.b32.xlu0 %v10_v1, %s36_s0  ;;  %23 = vrot.lane.b32.xlu1 %v22_v2, %s37_s8  ;;  %v16_v4 = vld [vmem:[#allocation1 + $0x2] sm:$0x1]   ;;  %8 = vst.msk [vmem:[#allocation0] sm:$0x1] %vm7_vm0, %v6_v3  }
   0xe   :  { %17 = vrot.lane.b32.xlu0 %v16_v4, %s38_s9 }
  0x7c   :  { %v12_v5 = vpop.permute.xlu0 %11   ;;  %v24_v6 = vpop.permute.xlu1 %23  }
  0x7d   :  { %14 = vst.msk [vmem:[#allocation0] sm:$0x1] %vm13_vm1, %v12_v5  }
  0x80   :  { %v18_v7 = vpop.permute.xlu0 %17  }
  0x81   :  { %20 = vst.msk [vmem:[#allocation0] sm:$0x1] %vm19_vm2, %v18_v7  }
  0x82   :  { %26 = vst.msk [vmem:[#allocation0] sm:$0x1] %vm25_vm3, %v24_v6  }
  0x89   :  { %v30_v8 = vld [vmem:[#allocation0] sm:$0x1] }
  0x8a   :  { %32 = vst [vmem:[%s56_s1] sm:$0x1] %v30_v8 }

// kernel: lenet_forward.1
= control target key start
LH: loop header
LB: loop body
LE: loop exit
PB: predicated region body
PF: predicated region fallthrough
CT: control target
= control target key end

     0   :  { %vm305_vm0 = vcmask 1045504   ;;  %vm268_vm1 = vcmask 228352   ;;  %vm2076_vm2 = vcmask 1043456   ;;  %vm2063_vm3 = vcmask 588800   ;;  %s5020_s22 = smov 64   ;;  %s6039_s1 = inlined_call_operand.vmem [shape: bf16[2,5,28,72], index: 1, kind: input, shape index: {}]   ;;  %s6040_s0 = inlined_call_operand.vmem [shape: bf16[28,8,28], index: 0, kind: input, shape index: {}]   ;;  %s6041_s3 = inlined_call_operand.vmem [shape: bf16[2,5,72,64], index: 3, kind: input, shape index: {}]   ;;  %s6042_s2 = inlined_call_operand.vmem [shape: f32[1,72], index: 2, kind: input, shape index: {}]   ;;  %s6043_s5 = inlined_call_operand.vmem [shape: bf16[256,120], index: 5, kind: input, shape index: {}]   ;;  %s6044_s4 = inlined_call_operand.vmem [shape: f32[1,64], index: 4, kind: input, shape index: {}]   ;;  %s6045_s7 = inlined_call_operand.vmem [shape: bf16[120,84], index: 7, kind: input, shape index: {}]   ;;  %s6046_s9 = inlined_call_operand.vmem [shape: bf16[84,10], index: 9, kind: input, shape index: {}]   ;;  %s6047_s6 = inlined_call_operand.vmem [shape: f32[1,120], index: 6, kind: input, shape index: {}]   ;;  %s6048_s8 = inlined_call_operand.vmem [shape: f32[1,84], index: 8, kind: input, shape index: {}]   ;;  %s6049_s10 = inlined_call_operand.vmem [shape: f32[1,10], index: 10, kind: input, shape index: {}]   ;;  %s6050_s11 = inlined_call_operand.vmem [shape: f32[8,10], index: 11, kind: output, shape index: {}]  }
   0x1   :  { %v4892_v0 = vld [vmem:[%s6039_s1 + $0x10] sm:$0xff]   ;;  %v4893_v1 = vld [vmem:[%s6039_s1 + $0x18] sm:$0x3f]   ;;  %v5091_v2 = vld [vmem:[%s6040_s0 + $0x4] sm:$0xf]  ;;  %vm3121_vm4 = vcmask 523264  }
   0x2   :  { %4112 = vmatprep.subr.bf16.mxu0 %v4892_v0  ;;  %4608 = vmatprep.subr.bf16.mxu1 %v4892_v0  ;;  %v5096_v3 = vld [vmem:[%s6040_s0 + $0x8] sm:$0xf]  ;;  %v307_v4 = vsel %vm305_vm0, %v4893_v1, 0  ;;  %v5102_v5 = vld [vmem:[%s6040_s0 + $0xc] sm:$0xf]  ;;  %v4902_v8 = vld [vmem:[%s6039_s1 + $0x60] sm:$0xff]  }
   0x3   :  { %4113 = vmatpush3.bf16.msra.mxu0 %v4892_v0  ;;  %4610 = vmatpush3.bf16.msra.mxu1 %v4892_v0  ;;  %v5107_v6 = vld [vmem:[%s6040_s0 + $0x10] sm:$0xf]  ;;  %v3528_v7 = vcombine.low %v5091_v2, %v5096_v3  ;;  %v5119_v9 = vld [vmem:[%s6040_s0 + $0x14] sm:$0xf]  ;;  %v61_v11 = vld [vmem:[%s6040_s0 + $0x58] sm:$0xf]  ;;  %v3555_v53 = vcombine.low %v5096_v3, %v5102_v5 }
   0x4   :  { %4868 = vmatprep.subr.msk.bf16.mxu0 %vm305_vm0, %v4893_v1  ;;  %4869 = vmatprep.subr.msk.bf16.mxu1 %vm305_vm0, %v4893_v1  ;;  %v5124_v10 = vld [vmem:[%s6040_s0 + $0x54] sm:$0xf]  ;;  %v62_v13 = vld [vmem:[%s6040_s0 + $0x5c] sm:$0xf]  ;;  %v5139_v14 = vld [vmem:[%s6040_s0 + $0x60] sm:$0xf]  ;;  %v5143_v15 = vcombine.low %v5102_v5, %v5107_v6  ;;  %v5311_v54 = vcombine.low %v5107_v6, %v5119_v9 }
   0x5   :  { %4116 = vmatprep.mubr.msk.bf16.mxu0 %vm268_vm1, %v3528_v7  ;;  %v5131_v12 = vcombine.low %v5124_v10, %v61_v11  ;;  %v5146_v16 = vcombine.low %v62_v13, %v5139_v14  ;;  %v5148_v17 = vcombine.low %v61_v11, %v62_v13  ;;  %v5153_v18 = vld [vmem:[%s6040_s0 + $0x18] sm:$0xf]  ;;  %v4903_v19 = vld [vmem:[%s6039_s1 + $0x68] sm:$0x3f]   ;;  %v5171_v21 = vld [vmem:[%s6040_s0 + $0x1c] sm:$0xf] }
   0x6   :  { %v5162_v20 = vcombine.low %v5119_v9, %v5153_v18  ;;  %v5178_v22 = vld [vmem:[%s6040_s0 + $0x20] sm:$0xf]  ;;  %v643_v24 = vsel %vm305_vm0, %v4903_v19, 0  ;;  %v4907_v25 = vld [vmem:[%s6039_s1 + $0x50] sm:$0xff]   ;;  %v5192_v26 = vld [vmem:[%s6040_s0 + $0x24] sm:$0xf]  ;;  %v5330_v58 = vcombine.low %v5153_v18, %v5171_v21 }
   0x7   :  { %4115 = vmatpush3.bf16.msra.mxu0 %v307_v4  ;;  %4611 = vmatpush3.bf16.msra.mxu1 %v307_v4  ;;  %v4912_v23 = vld [vmem:[%s6039_s1] sm:$0xff]   ;;  %v5197_v27 = vld [vmem:[%s6040_s0 + $0x28] sm:$0xf]  ;;  %v5201_v28 = vcombine.low %v5171_v21, %v5178_v22  ;;  %v4922_v30 = vld [vmem:[%s6039_s1 + $0x58] sm:$0x3f]   ;;  %v5334_v59 = vcombine.low %v5178_v22, %v5192_v26  ;;  %vm5021_vm5 = vmmov 0  }
   0x8   :  { %4136 = vmatprep.mubr.msk.bf16.mxu1 %vm268_vm1, %v5131_v12  ;;  %4168 = vmatprep.subr.bf16.mxu1 %v4902_v8  ;;  %v5205_v29 = vcombine.low %v5192_v26, %v5197_v27  ;;  %v4923_v31 = vld [vmem:[%s6039_s1 + $0x8] sm:$0x3f]   ;;  %v5221_v33 = vld [vmem:[%s6040_s0 + $0x30] sm:$0xf]  ;;  %v52_v34 = vld [vmem:[%s6040_s0 + $0x34] sm:$0xf] }
   0x9   :  { %4140 = vmatprep.subr.bf16.mxu0 %v4912_v23  ;;  %v5216_v32 = vld [vmem:[%s6040_s0 + $0x2c] sm:$0xf]  ;;  %v5233_v35 = vld [vmem:[%s6040_s0 + $0x38] sm:$0xf]  ;;  %v500_v36 = vsel %vm305_vm0, %v4923_v31, 0  ;;  %v4924_v37 = vld [vmem:[%s6039_s1 + $0x20] sm:$0xff]   ;;  %v5348_v61 = vcombine.low %v5221_v33, %v52_v34 }
   0xa   :  { %4117 = vmatmul.mubr.msk.bf16.vlgmr.msra.gmra.mrb[0].mxu0 %vm268_vm1, %v5143_v15  ;;  %4137 = vmatmul.mubr.msk.bf16.vlgmr.msra.gmra.mrb[0].mxu1 %vm268_vm1, %v5146_v16  ;;  %v786_v38 = vsel %vm305_vm0, %v4922_v30, 0  ;;  %v4925_v39 = vld [vmem:[%s6039_s1 + $0x70] sm:$0xff]   ;;  %v5251_v40 = vcombine.low %v5216_v32, %v5221_v33  ;;  %v5254_v41 = vcombine.low %v52_v34, %v5233_v35  ;;  %v54_v42 = vld [vmem:[%s6040_s0 + $0x3c] sm:$0xf]  ;;  %v55_v43 = vld [vmem:[%s6040_s0 + $0x40] sm:$0xf]  ;;  %v5345_v60 = vcombine.low %v5197_v27, %v5216_v32 }
   0xb   :  { %4169 = vmatpush3.bf16.msra.mxu1 %v4902_v8  ;;  %4120 = vmatprep.mubr.msk.bf16.mxu0 %vm268_vm1, %v5162_v20  ;;  %v56_v44 = vld [vmem:[%s6040_s0 + $0x44] sm:$0xf]  ;;  %v57_v45 = vld [vmem:[%s6040_s0 + $0x48] sm:$0xf]  ;;  %v5276_v46 = vcombine.low %v54_v42, %v55_v43  ;;  %v58_v48 = vld [vmem:[%s6040_s0 + $0x4c] sm:$0xf]  ;;  %v5366_v1 = vcombine.low %v5233_v35, %v54_v42 }
   0xc   :  { %4871 = vmatprep.subr.msk.bf16.mxu1 %vm305_vm0, %v4903_v19  ;;  %4172 = vmatprep.mubr.msk.bf16.mxu1 %vm268_vm1, %v3528_v7  ;;  %v5278_v47 = vcombine.low %v56_v44, %v57_v45  ;;  %v59_v49 = vld [vmem:[%s6040_s0 + $0x50] sm:$0xf]  ;;  %v39_v50 = vld [vmem:[%s6040_s0] sm:$0xf]  ;;  %v4926_v55 = vld [vmem:[%s6039_s1 + $0x28] sm:$0x3f]   ;;  %v5378_v3 = vcombine.low %v57_v45, %v58_v48 }
   0xd   :  { %4141 = vmatpush3.bf16.msra.mxu0 %v4912_v23  ;;  %v5297_v51 = vcombine.low %v58_v48, %v59_v49  ;;  %v3554_v52 = vcombine.low %v39_v50, %v5091_v2  ;;  %v935_v56 = vsel %vm305_vm0, %v4926_v55, 0  ;;  %v4928_v57 = vld [vmem:[%s6039_s1 + $0x30] sm:$0xff]   ;;  %v4927_v62 = vld [vmem:[%s6039_s1 + $0x78] sm:$0x3f]   ;;  %v4929_v0 = vld [vmem:[%s6039_s1 + $0x80] sm:$0xff]   ;;  %v5368_v2 = vcombine.low %v55_v43, %v56_v44 }
   0xe   :  { %4870 = vmatprep.subr.msk.bf16.mxu0 %vm305_vm0, %v4923_v31  ;;  %v1102_v63 = vsel %vm305_vm0, %v4927_v62, 0  ;;  %v5381_v4 = vcombine.low %v59_v49, %v5124_v10  ;;  %v4931_v5 = vld [vmem:[%s6039_s1 + $0x38] sm:$0x3f]   ;;  %v4933_v7 = vld [vmem:[%s6039_s1 + $0x40] sm:$0xff]   ;;  %v4932_v8 = vld [vmem:[%s6039_s1 + $0x88] sm:$0x3f]  }
   0xf   :  { %4171 = vmatpush3.bf16.msra.mxu1 %v643_v24  ;;  %v1275_v6 = vsel %vm305_vm0, %v4931_v5, 0  ;;  %v1442_v9 = vsel %vm305_vm0, %v4932_v8, 0  ;;  %v4934_v10 = vld [vmem:[%s6039_s1 + $0x90] sm:$0xff]   ;;  %v64_v11 = vld [vmem:[%s6040_s0 + $0x64] sm:$0xf]  ;;  %v4940_v27 = vld [vmem:[%s6041_s3 + $0xd8] sm:$0xff]  }
  0x10   :  { %4196 = vmatprep.subr.bf16.mxu1 %v4907_v25  ;;  %v5457_v13 = vcombine.low %v5139_v14, %v64_v11  ;;  %v4936_v18 = vld [vmem:[%s6039_s1 + $0x48] sm:$0x3f]   ;;  %v4937_v19 = vld [vmem:[%s6039_s1 + $0x98] sm:$0x3f]   ;;  %v4946_v32 = vld [vmem:[%s6041_s3 + $0xf0] sm:$0xff]   ;;  %vm3374_vm6 = vcmask 982016  }
  0x11   :  { %4143 = vmatpush3.bf16.msra.mxu0 %v500_v36  ;;  %v1615_v14 = vsel %vm305_vm0, %v4936_v18, 0  ;;  %v66_v24 = vld [vmem:[%s6040_s0 + $0x6c] sm:$0xf]  ;;  %v4939_v26 = vld [vmem:[%s6041_s3 + $0x24] sm:$0xff]   ;;  %v4945_v31 = vld [vmem:[%s6041_s3 + $0x3c] sm:$0xff]   ;;  %vm3478_vm7 = vcmask 1041408  }
  0x12   :  { %4121 = vmatmul.mubr.msk.bf16.gmra.mrb[4].mxu0 %vm268_vm1, %v5201_v28  ;;  %4173 = vmatmul.mubr.msk.bf16.vlgmr.msra.gmra.mrb[4].mxu1 %vm268_vm1, %v5143_v15  ;;  %v4947_v33 = vld [vmem:[%s6041_s3 + $0x44] ss:$0 sps:$4 sm:$0xff]   ;;  %v4948_v34 = vld [vmem:[%s6041_s3 + $0xf8] ss:$0 sps:$4 sm:$0xff]   ;;  %vm3474_vm8 = vcmask 687104   ;;  %vm3522_vm9 = vcmask 80896  }
  0x13   :  { %4197 = vmatpush3.bf16.msra.mxu1 %v4907_v25  ;;  %4124 = vmatprep.mubr.msk.bf16.mxu0 %vm268_vm1, %v5205_v29  ;;  %v2078_v35 = vsel %vm2076_vm2, %v4947_v33, 0  ;;  %v2286_v36 = vsel %vm2076_vm2, %v4948_v34, 0 }
  0x14   :  { %4176 = vmatprep.mubr.msk.bf16.mxu1 %vm268_vm1, %v5162_v20  ;;  %4872 = vmatprep.subr.msk.bf16.mxu1 %vm305_vm0, %v4922_v30  ;;  %v4944_v30 = vld [vmem:[%s6041_s3 + $0xe8] sm:$0xff]  }
  0x15   :  { %4224 = vmatprep.subr.bf16.mxu0 %v4924_v37 }
  0x17   :  { %4199 = vmatpush3.bf16.msra.mxu1 %v786_v38  ;;  %v5629_v38 = vld [vmem:[%s6041_s3 + $0xb4] sm:$0xff]  }
  0x18   :  { %4252 = vmatprep.subr.bf16.mxu1 %v4925_v39 }
  0x1a   :  { %4125 = vmatmul.mubr.msk.bf16.gmra.mrb[8].mxu0 %vm268_vm1, %v5251_v40  ;;  %4177 = vmatmul.mubr.msk.bf16.gmra.mrb[8].mxu1 %vm268_vm1, %v5201_v28 }
  0x1b   :  { %4128 = vmatprep.mubr.msk.bf16.mxu0 %vm268_vm1, %v5254_v41  ;;  %4180 = vmatprep.mubr.msk.bf16.mxu1 %vm268_vm1, %v5205_v29 }
  0x22   :  { %4129 = vmatmul.mubr.msk.bf16.gmra.mrb[12].mxu0 %vm268_vm1, %v5276_v46  ;;  %4181 = vmatmul.mubr.msk.bf16.gmra.mrb[12].mxu1 %vm268_vm1, %v5251_v40 }
  0x23   :  { %4132 = vmatprep.mubr.msk.bf16.mxu0 %vm268_vm1, %v5278_v47  ;;  %4184 = vmatprep.mubr.msk.bf16.mxu1 %vm268_vm1, %v5254_v41 }
  0x2a   :  { %4133 = vmatmul.mubr.msk.bf16.gmra.mrb[16].mxu0 %vm268_vm1, %v5297_v51  ;;  %4185 = vmatmul.mubr.msk.bf16.gmra.mrb[16].mxu1 %vm268_vm1, %v5276_v46 }
  0x2b   :  { %4144 = vmatprep.mubr.msk.bf16.mxu0 %vm268_vm1, %v3554_v52  ;;  %4188 = vmatprep.mubr.msk.bf16.mxu1 %vm268_vm1, %v5278_v47 }
  0x32   :  { %4145 = vmatmul.mubr.msk.bf16.vlgmr.msra.gmra.mrb[0].mxu0 %vm268_vm1, %v3555_v53  ;;  %4189 = vmatmul.mubr.msk.bf16.gmra.mrb[20].mxu1 %vm268_vm1, %v5297_v51 }
  0x33   :  { %4148 = vmatprep.mubr.msk.bf16.mxu0 %vm268_vm1, %v5311_v54  ;;  %4192 = vmatprep.mubr.msk.bf16.mxu1 %vm268_vm1, %v5131_v12 }
  0x34   :  { %4225 = vmatpush3.bf16.msra.mxu0 %v4924_v37  ;;  %v5624_v37 = vld [vmem:[%s6041_s3] sm:$0xff]  }
  0x35   :  { %4873 = vmatprep.subr.msk.bf16.mxu0 %vm305_vm0, %v4926_v55 }
  0x38   :  { %4227 = vmatpush3.bf16.msra.mxu0 %v935_v56 }
  0x39   :  { %4280 = vmatprep.subr.bf16.mxu0 %v4928_v57 }
  0x3a   :  { %4149 = vmatmul.mubr.msk.bf16.gmra.mrb[4].mxu0 %vm268_vm1, %v5330_v58  ;;  %4193 = vmatmul.mubr.msk.bf16.gmra.mrb[24].mxu1 %vm268_vm1, %v5146_v16 }
  0x3b   :  { %4152 = vmatprep.mubr.msk.bf16.mxu0 %vm268_vm1, %v5334_v59  ;;  %4200 = vmatprep.mubr.msk.bf16.mxu1 %vm268_vm1, %v3554_v52 }
  0x42   :  { %4153 = vmatmul.mubr.msk.bf16.gmra.mrb[8].mxu0 %vm268_vm1, %v5345_v60  ;;  %4201 = vmatmul.mubr.msk.bf16.vlgmr.msra.gmra.mrb[4].mxu1 %vm268_vm1, %v3555_v53 }
  0x43   :  { %4253 = vmatpush3.bf16.msra.mxu1 %v4925_v39  ;;  %4156 = vmatprep.mubr.msk.bf16.mxu0 %vm268_vm1, %v5348_v61 }
  0x44   :  { %4204 = vmatprep.mubr.msk.bf16.mxu1 %vm268_vm1, %v5311_v54  ;;  %4874 = vmatprep.subr.msk.bf16.mxu1 %vm305_vm0, %v4927_v62 }
  0x47   :  { %4255 = vmatpush3.bf16.msra.mxu1 %v1102_v63 }
  0x48   :  { %4308 = vmatprep.subr.bf16.mxu1 %v4929_v0 }
  0x4a   :  { %4157 = vmatmul.mubr.msk.bf16.gmra.mrb[12].mxu0 %vm268_vm1, %v5366_v1  ;;  %4205 = vmatmul.mubr.msk.bf16.gmra.mrb[8].mxu1 %vm268_vm1, %v5330_v58 }
  0x4b   :  { %4160 = vmatprep.mubr.msk.bf16.mxu0 %vm268_vm1, %v5368_v2  ;;  %4208 = vmatprep.mubr.msk.bf16.mxu1 %vm268_vm1, %v5334_v59 }
  0x52   :  { %4161 = vmatmul.mubr.msk.bf16.gmra.mrb[16].mxu0 %vm268_vm1, %v5378_v3  ;;  %4209 = vmatmul.mubr.msk.bf16.gmra.mrb[12].mxu1 %vm268_vm1, %v5345_v60 }
  0x53   :  { %4164 = vmatprep.mubr.msk.bf16.mxu0 %vm268_vm1, %v5381_v4  ;;  %4212 = vmatprep.mubr.msk.bf16.mxu1 %vm268_vm1, %v5348_v61 }
  0x5a   :  { %4165 = vmatmul.mubr.msk.bf16.gmra.mrb[20].mxu0 %vm268_vm1, %v5148_v17  ;;  %4213 = vmatmul.mubr.msk.bf16.gmra.mrb[16].mxu1 %vm268_vm1, %v5366_v1 }
  0x5b   :  { %4216 = vmatprep.mubr.msk.bf16.mxu1 %vm268_vm1, %v5368_v2  ;;  %4228 = vmatprep.mubr.msk.bf16.mxu0 %vm268_vm1, %v3555_v53 }
  0x62   :  { %4217 = vmatmul.mubr.msk.bf16.gmra.mrb[20].mxu1 %vm268_vm1, %v5378_v3  ;;  %4229 = vmatmul.mubr.msk.bf16.vlgmr.msra.gmra.mrb[0].mxu0 %vm268_vm1, %v5311_v54 }
  0x63   :  { %4220 = vmatprep.mubr.msk.bf16.mxu1 %vm268_vm1, %v5381_v4  ;;  %4232 = vmatprep.mubr.msk.bf16.mxu0 %vm268_vm1, %v5330_v58 }
  0x64   :  { %4281 = vmatpush3.bf16.msra.mxu0 %v4928_v57 }
  0x65   :  { %4875 = vmatprep.subr.msk.bf16.mxu0 %vm305_vm0, %v4931_v5 }
  0x68   :  { %4283 = vmatpush3.bf16.msra.mxu0 %v1275_v6 }
  0x69   :  { %4336 = vmatprep.subr.bf16.mxu0 %v4933_v7 }
  0x6a   :  { %4221 = vmatmul.mubr.msk.bf16.gmra.mrb[24].mxu1 %vm268_vm1, %v5148_v17  ;;  %4233 = vmatmul.mubr.msk.bf16.gmra.mrb[4].mxu0 %vm268_vm1, %v5334_v59 }
  0x6b   :  { %4236 = vmatprep.mubr.msk.bf16.mxu0 %vm268_vm1, %v5345_v60  ;;  %4256 = vmatprep.mubr.msk.bf16.mxu1 %vm268_vm1, %v3555_v53 }
  0x72   :  { %4237 = vmatmul.mubr.msk.bf16.gmra.mrb[8].mxu0 %vm268_vm1, %v5348_v61  ;;  %4257 = vmatmul.mubr.msk.bf16.vlgmr.msra.gmra.mrb[4].mxu1 %vm268_vm1, %v5311_v54 }
  0x73   :  { %4309 = vmatpush3.bf16.msra.mxu1 %v4929_v0  ;;  %4240 = vmatprep.mubr.msk.bf16.mxu0 %vm268_vm1, %v5366_v1 }
  0x74   :  { %4260 = vmatprep.mubr.msk.bf16.mxu1 %vm268_vm1, %v5330_v58  ;;  %4876 = vmatprep.subr.msk.bf16.mxu1 %vm305_vm0, %v4932_v8 }
  0x77   :  { %4311 = vmatpush3.bf16.msra.mxu1 %v1442_v9 }
  0x78   :  { %4364 = vmatprep.subr.bf16.mxu1 %v4934_v10 }
  0x7a   :  { %4241 = vmatmul.mubr.msk.bf16.gmra.mrb[12].mxu0 %vm268_vm1, %v5368_v2  ;;  %4261 = vmatmul.mubr.msk.bf16.gmra.mrb[8].mxu1 %vm268_vm1, %v5334_v59 }
  0x7b   :  { %4244 = vmatprep.mubr.msk.bf16.mxu0 %vm268_vm1, %v5378_v3  ;;  %4264 = vmatprep.mubr.msk.bf16.mxu1 %vm268_vm1, %v5345_v60 }
  0x82   :  { %4245 = vmatmul.mubr.msk.bf16.gmra.mrb[16].mxu0 %vm268_vm1, %v5381_v4  ;;  %4265 = vmatmul.mubr.msk.bf16.gmra.mrb[12].mxu1 %vm268_vm1, %v5348_v61 }
  0x83   :  { %4248 = vmatprep.mubr.msk.bf16.mxu0 %vm268_vm1, %v5148_v17  ;;  %4268 = vmatprep.mubr.msk.bf16.mxu1 %vm268_vm1, %v5366_v1 }
  0x8a   :  { %4249 = vmatmul.mubr.msk.bf16.gmra.mrb[20].mxu0 %vm268_vm1, %v5457_v13  ;;  %4269 = vmatmul.mubr.msk.bf16.gmra.mrb[16].mxu1 %vm268_vm1, %v5368_v2 }
  0x8b   :  { %4272 = vmatprep.mubr.msk.bf16.mxu1 %vm268_vm1, %v5378_v3  ;;  %4284 = vmatprep.mubr.msk.bf16.mxu0 %vm268_vm1, %v5143_v15 }
  0x92   :  { %4273 = vmatmul.mubr.msk.bf16.gmra.mrb[20].mxu1 %vm268_vm1, %v5381_v4  ;;  %4285 = vmatmul.mubr.msk.bf16.vlgmr.msra.gmra.mrb[0].mxu0 %vm268_vm1, %v5162_v20 }
  0x93   :  { %4276 = vmatprep.mubr.msk.bf16.mxu1 %vm268_vm1, %v5148_v17  ;;  %4288 = vmatprep.mubr.msk.bf16.mxu0 %vm268_vm1, %v5201_v28 }
  0x94   :  { %4337 = vmatpush3.bf16.msra.mxu0 %v4933_v7 }
  0x95   :  { %4877 = vmatprep.subr.msk.bf16.mxu0 %vm305_vm0, %v4936_v18 }
  0x98   :  { %4339 = vmatpush3.bf16.msra.mxu0 %v1615_v14 }
  0x99   :  { %4392 = vmatprep.subr.bf16.mxu0 %v4939_v26 }
  0x9a   :  { %4277 = vmatmul.mubr.msk.bf16.gmra.mrb[24].mxu1 %vm268_vm1, %v5457_v13  ;;  %4289 = vmatmul.mubr.msk.bf16.gmra.mrb[4].mxu0 %vm268_vm1, %v5205_v29 }
  0x9b   :  { %4292 = vmatprep.mubr.msk.bf16.mxu0 %vm268_vm1, %v5251_v40  ;;  %4312 = vmatprep.mubr.msk.bf16.mxu1 %vm268_vm1, %v5143_v15  ;;  %v1782_v15 = vsel %vm305_vm0, %v4937_v19, 0 }
  0xa2   :  { %4293 = vmatmul.mubr.msk.bf16.gmra.mrb[8].mxu0 %vm268_vm1, %v5254_v41  ;;  %4313 = vmatmul.mubr.msk.bf16.vlgmr.msra.gmra.mrb[4].mxu1 %vm268_vm1, %v5162_v20  ;;  %v65_v20 = vld [vmem:[%s6040_s0 + $0x68] sm:$0xf] }
  0xa3   :  { %4365 = vmatpush3.bf16.msra.mxu1 %v4934_v10  ;;  %4296 = vmatprep.mubr.msk.bf16.mxu0 %vm268_vm1, %v5276_v46  ;;  %v3637_v21 = vcombine.low %v64_v11, %v65_v20  ;;  %v3666_v25 = vcombine.low %v65_v20, %v66_v24 }
  0xa4   :  { %4316 = vmatprep.mubr.msk.bf16.mxu1 %vm268_vm1, %v5201_v28  ;;  %4878 = vmatprep.subr.msk.bf16.mxu1 %vm305_vm0, %v4937_v19  ;;  %v4942_v28 = vld [vmem:[%s6041_s3 + $0xe0] sm:$0xff]  }
  0xa7   :  { %4367 = vmatpush3.bf16.msra.mxu1 %v1782_v15 }
  0xa8   :  { %4428 = vmatprep.subr.bf16.mxu1 %v4940_v27 }
  0xaa   :  { %4297 = vmatmul.mubr.msk.bf16.gmra.mrb[12].mxu0 %vm268_vm1, %v5278_v47  ;;  %4317 = vmatmul.mubr.msk.bf16.gmra.mrb[8].mxu1 %vm268_vm1, %v5205_v29  ;;  %v4943_v29 = vld [vmem:[%s6041_s3 + $0x34] sm:$0xff]  }
  0xab   :  { %4300 = vmatprep.mubr.msk.bf16.mxu0 %vm268_vm1, %v5297_v51  ;;  %4320 = vmatprep.mubr.msk.bf16.mxu1 %vm268_vm1, %v5251_v40 }
  0xb2   :  { %4301 = vmatmul.mubr.msk.bf16.gmra.mrb[16].mxu0 %vm268_vm1, %v5131_v12  ;;  %4321 = vmatmul.mubr.msk.bf16.gmra.mrb[12].mxu1 %vm268_vm1, %v5254_v41 }
  0xb3   :  { %4304 = vmatprep.mubr.msk.bf16.mxu0 %vm268_vm1, %v5146_v16  ;;  %4324 = vmatprep.mubr.msk.bf16.mxu1 %vm268_vm1, %v5276_v46 }
  0xba   :  { %4305 = vmatmul.mubr.msk.bf16.gmra.mrb[20].mxu0 %vm268_vm1, %v3637_v21  ;;  %4325 = vmatmul.mubr.msk.bf16.gmra.mrb[16].mxu1 %vm268_vm1, %v5278_v47 }
  0xbb   :  { %4328 = vmatprep.mubr.msk.bf16.mxu1 %vm268_vm1, %v5297_v51  ;;  %4340 = vmatprep.mubr.msk.bf16.mxu0 %vm268_vm1, %v5311_v54 }
  0xc2   :  { %4329 = vmatmul.mubr.msk.bf16.gmra.mrb[20].mxu1 %vm268_vm1, %v5131_v12  ;;  %4341 = vmatmul.mubr.msk.bf16.vlgmr.msra.gmra.mrb[0].mxu0 %vm268_vm1, %v5330_v58 }
  0xc3   :  { %4332 = vmatprep.mubr.msk.bf16.mxu1 %vm268_vm1, %v5146_v16  ;;  %4344 = vmatprep.mubr.msk.bf16.mxu0 %vm268_vm1, %v5334_v59 }
  0xc4   :  { %4393 = vmatpush3.bf16.msra.mxu0 %v4939_v26 }
  0xca   :  { %4333 = vmatmul.mubr.msk.bf16.gmra.mrb[24].mxu1 %vm268_vm1, %v3637_v21  ;;  %4345 = vmatmul.mubr.msk.bf16.gmra.mrb[4].mxu0 %vm268_vm1, %v5345_v60 }
  0xcb   :  { %4348 = vmatprep.mubr.msk.bf16.mxu0 %vm268_vm1, %v5348_v61  ;;  %4368 = vmatprep.mubr.msk.bf16.mxu1 %vm268_vm1, %v5311_v54 }
  0xd2   :  { %4349 = vmatmul.mubr.msk.bf16.gmra.mrb[8].mxu0 %vm268_vm1, %v5366_v1  ;;  %4369 = vmatmul.mubr.msk.bf16.vlgmr.msra.gmra.mrb[4].mxu1 %vm268_vm1, %v5330_v58 }
  0xd3   :  { %4352 = vmatprep.mubr.msk.bf16.mxu0 %vm268_vm1, %v5368_v2  ;;  %4372 = vmatprep.mubr.msk.bf16.mxu1 %vm268_vm1, %v5334_v59 }
  0xd4   :  { %4429 = vmatpush3.bf16.msra.mxu1 %v4940_v27 }
  0xd5   :  { %4430 = vmatprep.subr.bf16.mxu1 %v4942_v28 }
  0xd8   :  { %4431 = vmatpush3.bf16.msra.mxu1 %v4942_v28 }
  0xd9   :  { %4432 = vmatprep.subr.bf16.mxu1 %v4944_v30 }
  0xda   :  { %4353 = vmatmul.mubr.msk.bf16.gmra.mrb[12].mxu0 %vm268_vm1, %v5378_v3  ;;  %4373 = vmatmul.mubr.msk.bf16.gmra.mrb[8].mxu1 %vm268_vm1, %v5345_v60 }
  0xdb   :  { %4356 = vmatprep.mubr.msk.bf16.mxu0 %vm268_vm1, %v5381_v4  ;;  %4376 = vmatprep.mubr.msk.bf16.mxu1 %vm268_vm1, %v5348_v61  ;;  %v5636_v61 = vld [vmem:[%s6042_s2] ss:$0 sm:$0xff] }
  0xdc   :  { %4433 = vmatpush3.bf16.msra.mxu1 %v4944_v30 }
  0xdd   :  { %v5558_v12 = vpop.f32.mrb[0].mxu1  ;;  %4434 = vmatprep.subr.bf16.mxu1 %v4946_v32 }
  0xde   :  { %v5560_v16 = vpop.f32.mrb[1].mxu1 }
  0xdf   :  { %v5562_v22 = vpop.f32.mrb[2].mxu1 }
  0xe0   :  { %v5564_v23 = vpop.f32.mrb[3].mxu1  ;;  %4435 = vmatpush3.bf16.msra.mxu1 %v4946_v32 }
  0xe1   :  { %4881 = vmatprep.subr.msk.bf16.mxu1 %vm2076_vm2, %v4948_v34 }
  0xe2   :  { %4357 = vmatmul.mubr.msk.bf16.gmra.mrb[16].mxu0 %vm268_vm1, %v5148_v17  ;;  %4377 = vmatmul.mubr.msk.bf16.gmra.mrb[12].mxu1 %vm268_vm1, %v5366_v1 }
  0xe3   :  { %4360 = vmatprep.mubr.msk.bf16.mxu0 %vm268_vm1, %v5457_v13  ;;  %4380 = vmatprep.mubr.msk.bf16.mxu1 %vm268_vm1, %v5368_v2 }
  0xe4   :  { %4437 = vmatpush3.bf16.msra.mxu1 %v2286_v36 }
  0xe5   :  { %4446 = vmatprep.subr.bf16.mxu1 %v5629_v38 }
  0xea   :  { %4361 = vmatmul.mubr.msk.bf16.gmra.mrb[20].mxu0 %vm268_vm1, %v3666_v25  ;;  %4381 = vmatmul.mubr.msk.bf16.gmra.mrb[16].mxu1 %vm268_vm1, %v5378_v3 }
  0xeb   :  { %4384 = vmatprep.mubr.msk.bf16.mxu1 %vm268_vm1, %v5381_v4 }
  0xf2   :  { %4385 = vmatmul.mubr.msk.bf16.gmra.mrb[20].mxu1 %vm268_vm1, %v5148_v17  ;;  %v4941_v17 = vld [vmem:[%s6041_s3 + $0x2c] sm:$0xff]  }
  0xf3   :  { %4388 = vmatprep.mubr.msk.bf16.mxu1 %vm268_vm1, %v5457_v13  ;;  %4394 = vmatprep.subr.bf16.mxu0 %v4941_v17 }
  0xf4   :  { %4395 = vmatpush3.bf16.msra.mxu0 %v4941_v17 }
  0xf5   :  { %4396 = vmatprep.subr.bf16.mxu0 %v4943_v29 }
  0xf8   :  { %4397 = vmatpush3.bf16.msra.mxu0 %v4943_v29 }
  0xf9   :  { %4398 = vmatprep.subr.bf16.mxu0 %v4945_v31 }
  0xfa   :  { %4389 = vmatmul.mubr.msk.bf16.gmra.mrb[24].mxu1 %vm268_vm1, %v3666_v25 }
  0xfc   :  { %4399 = vmatpush3.bf16.msra.mxu0 %v4945_v31 }
  0xfd   :  { %4879 = vmatprep.subr.msk.bf16.mxu0 %vm2076_vm2, %v4947_v33 }
 0x100   :  { %4401 = vmatpush3.bf16.msra.mxu0 %v2078_v35 }
 0x101   :  { %4410 = vmatprep.subr.bf16.mxu0 %v5624_v37 }
 0x195   :  { %v4342_v39 = vpop.f32.mrb[0].mxu0 }
 0x196   :  { %v1651_v40 = vpop.f32.mrb[1].mxu0 }
 0x197   :  { %v4343_v41 = vpop.f32.mrb[2].mxu0 }
 0x198   :  { %v1938_v42 = vmax.f32 %v4342_v39, %v4343_v41  ;;  %v1654_v43 = vpop.f32.mrb[3].mxu0 }
 0x199   :  { %v1937_v44 = vmax.f32 %v1651_v40, %v1654_v43 }
 0x19d   :  { %v4346_v45 = vpop.f32.mrb[4].mxu0 }
 0x19e   :  { %v1667_v46 = vpop.f32.mrb[5].mxu0 }
 0x19f   :  { %v4347_v47 = vpop.f32.mrb[6].mxu0 }
 0x1a0   :  { %v1940_v48 = vmax.f32 %v4346_v45, %v4347_v47  ;;  %v1670_v49 = vpop.f32.mrb[7].mxu0 }
 0x1a1   :  { %v1939_v50 = vmax.f32 %v1667_v46, %v1670_v49 }
 0x1a5   :  { %v4350_v51 = vpop.f32.mrb[8].mxu0  ;;  %v4370_v52 = vpop.f32.mrb[4].mxu1 }
 0x1a6   :  { %v1683_v53 = vpop.f32.mrb[9].mxu0  ;;  %v1818_v54 = vpop.f32.mrb[5].mxu1 }
 0x1a7   :  { %v4351_v55 = vpop.f32.mrb[10].mxu0  ;;  %v4371_v56 = vpop.f32.mrb[6].mxu1 }
 0x1a8   :  { %v1942_v57 = vmax.f32 %v4350_v51, %v4351_v55  ;;  %v1950_v58 = vmax.f32 %v4370_v52, %v4371_v56  ;;  %v1686_v59 = vpop.f32.mrb[11].mxu0  ;;  %v1821_v60 = vpop.f32.mrb[7].mxu1 }
 0x1a9   :  { %v1941_v62 = vmax.f32 %v1683_v53, %v1686_v59  ;;  %v1949_v63 = vmax.f32 %v1818_v54, %v1821_v60 }
 0x1aa   :  { %v1962_v0 = vmax.f32 %v1938_v42, %v1950_v58 }
 0x1ab   :  { %v1961_v1 = vmax.f32 %v1937_v44, %v1949_v63 }
 0x1ac   :  { %v1981_v2 = vadd.f32 %v5636_v61, %v1962_v0 }
 0x1ad   :  { %v1980_v3 = vadd.f32 %v5636_v61, %v1961_v1  ;;  %v5640_v4 = vpop.f32.mrb[12].mxu0  ;;  %v4374_v5 = vpop.f32.mrb[8].mxu1 }
 0x1ae   :  { %v1993_v6 = vmax.f32 %v1981_v2, 0.0  ;;  %v5642_v7 = vpop.f32.mrb[13].mxu0  ;;  %v1834_v8 = vpop.f32.mrb[9].mxu1 }
 0x1af   :  { %v1992_v9 = vmax.f32 %v1980_v3, 0.0  ;;  %v4355_v10 = vpop.f32.mrb[14].mxu0  ;;  %v4375_v11 = vpop.f32.mrb[10].mxu1 }
 0x1b0   :  { %v1944_v13 = vmax.f32 %v5640_v4, %v4355_v10  ;;  %v1952_v18 = vmax.f32 %v4374_v5, %v4375_v11  ;;  %v1702_v14 = vpop.f32.mrb[15].mxu0  ;;  %v1837_v19 = vpop.f32.mrb[11].mxu1  ;;  %v4954_v10 = vld [vmem:[%s6041_s3 + $0xc4] sm:$0xff]  }
 0x1b1   :  { %v5645_v15 = vpack.c.bf16 %v1993_v6, %v1992_v9  ;;  %v1943_v20 = vmax.f32 %v5642_v7, %v1702_v14  ;;  %v1951_v21 = vmax.f32 %v1834_v8, %v1837_v19  ;;  %v4953_v9 = vld [vmem:[%s6041_s3 + $0x10] sm:$0xff]  }
 0x1b2   :  { %v1964_v24 = vmax.f32 %v1940_v48, %v1952_v18 }
 0x1b3   :  { %v1963_v25 = vmax.f32 %v1939_v50, %v1951_v21 }
 0x1b4   :  { %v1983_v26 = vadd.f32 %v5636_v61, %v1964_v24  ;;  %v4955_v24 = vld [vmem:[%s6041_s3 + $0x18] sm:$0xff]  }
 0x1b5   :  { %v1982_v27 = vadd.f32 %v5636_v61, %v1963_v25  ;;  %v5650_v17 = vpop.f32.mrb[16].mxu0  ;;  %v4378_v28 = vpop.f32.mrb[12].mxu1  ;;  %v4956_v25 = vld [vmem:[%s6041_s3 + $0xcc] sm:$0xff]  }
 0x1b6   :  { %v1995_v29 = vmax.f32 %v1983_v26, 0.0  ;;  %v5652_v30 = vpop.f32.mrb[17].mxu0  ;;  %v1850_v31 = vpop.f32.mrb[13].mxu1 }
 0x1b7   :  { %v1994_v32 = vmax.f32 %v1982_v27, 0.0  ;;  %v5654_v33 = vpop.f32.mrb[18].mxu0  ;;  %v4379_v34 = vpop.f32.mrb[14].mxu1 }
 0x1b8   :  { %v1946_v35 = vmax.f32 %v5650_v17, %v5654_v33  ;;  %v1954_v36 = vmax.f32 %v4378_v28, %v4379_v34  ;;  %v5658_v39 = vpop.f32.mrb[19].mxu0  ;;  %v1853_v40 = vpop.f32.mrb[15].mxu1  ;;  %v4957_v17 = vld [vmem:[%s6041_s3 + $0x20] ss:$0 sps:$4 sm:$0xff]  }
 0x1b9   :  { %v3833_v41 = vpack.c.bf16 %v1994_v32, %v1993_v6  ;;  %v5660_v42 = vpack.c.bf16 %v1995_v29, %v1994_v32  ;;  %v1945_v43 = vmax.f32 %v5652_v30, %v5658_v39  ;;  %v1953_v44 = vmax.f32 %v1850_v31, %v1853_v40  ;;  %v4958_v31 = vld [vmem:[%s6041_s3 + $0xd4] ss:$0 sps:$4 sm:$0xff]  }
 0x1ba   :  { %v1966_v45 = vmax.f32 %v1942_v57, %v1954_v36 }
 0x1bb   :  { %v1965_v46 = vmax.f32 %v1941_v62, %v1953_v44  ;;  %4402 = vmatprep.mubr.msk.bf16.mxu0 %vm2063_vm3, %v3833_v41  ;;  %4438 = vmatprep.mubr.msk.bf16.mxu1 %vm2063_vm3, %v3833_v41 }
 0x1bc   :  { %v1985_v47 = vadd.f32 %v5636_v61, %v1966_v45  ;;  %v2191_v45 = vsel %vm2076_vm2, %v4957_v17, 0 }
 0x1bd   :  { %v1984_v48 = vadd.f32 %v5636_v61, %v1965_v46  ;;  %v4362_v49 = vpop.f32.mrb[20].mxu0  ;;  %v4382_v50 = vpop.f32.mrb[16].mxu1  ;;  %v2381_v46 = vsel %vm2076_vm2, %v4958_v31, 0 }
 0x1be   :  { %v1997_v51 = vmax.f32 %v1985_v47, 0.0  ;;  %v5669_v52 = vadd.f32 %v4362_v49, %v5558_v12  ;;  %v1731_v53 = vpop.f32.mrb[21].mxu0  ;;  %v1866_v54 = vpop.f32.mrb[17].mxu1  ;;  %v4959_v47 = vld [vmem:[%s6041_s3 + $0x48] sm:$0xff]  }
 0x1bf   :  { %v1996_v55 = vmax.f32 %v1984_v48, 0.0  ;;  %v5672_v56 = vadd.f32 %v1731_v53, %v5560_v16  ;;  %v4363_v57 = vpop.f32.mrb[22].mxu0  ;;  %v4383_v58 = vpop.f32.mrb[18].mxu1  ;;  %v4951_v16 = vld [vmem:[%s6041_s3 + $0x8] sm:$0xff]   ;;  %v4960_v48 = vld [vmem:[%s6041_s3 + $0xfc] sm:$0xff]  }
 0x1c0   :  { %v5675_v59 = vadd.f32 %v4363_v57, %v5562_v22  ;;  %v1956_v60 = vmax.f32 %v4382_v50, %v4383_v58  ;;  %v1734_v62 = vpop.f32.mrb[23].mxu0  ;;  %v1869_v63 = vpop.f32.mrb[19].mxu1  ;;  %v4952_v22 = vld [vmem:[%s6041_s3 + $0xbc] sm:$0xff]   ;;  %v4964_v57 = vld [vmem:[%s6041_s3 + $0x10c] sm:$0xff]  }
 0x1c1   :  { %v5677_v0 = vpack.c.bf16 %v1996_v55, %v1995_v29  ;;  %v5679_v1 = vpack.c.bf16 %v1997_v51, %v1996_v55  ;;  %v5682_v12 = vadd.f32 %v1734_v62, %v5564_v23  ;;  %v1955_v2 = vmax.f32 %v1866_v54, %v1869_v63  ;;  %v4965_v58 = vld [vmem:[%s6041_s3 + $0x60] sm:$0xff]   ;;  %v4968_v62 = vld [vmem:[%s6041_s3 + $0x11c] ss:$0 sps:$4 sm:$0xff]  }
 0x1c2   :  { %v1948_v3 = vmax.f32 %v5669_v52, %v5675_v59  ;;  %v1968_v4 = vmax.f32 %v1944_v13, %v1956_v60  ;;  %v4966_v59 = vld [vmem:[%s6041_s3 + $0x114] sm:$0xff]   ;;  %v4967_v60 = vld [vmem:[%s6041_s3 + $0x68] ss:$0 sps:$4 sm:$0xff]  }
 0x1c3   :  { %v1947_v5 = vmax.f32 %v5672_v56, %v5682_v12  ;;  %v1967_v6 = vmax.f32 %v1943_v20, %v1955_v2  ;;  %4403 = vmatmul.mubr.msk.bf16.vlgmr.msra.gmra.mrb[24].mxu0 %vm2063_vm3, %v5677_v0  ;;  %4439 = vmatmul.mubr.msk.bf16.vlgmr.msra.gmra.mrb[28].mxu1 %vm2063_vm3, %v5677_v0  ;;  %v4961_v56 = vld [vmem:[%s6041_s3 + $0x50] sm:$0xff]   ;;  %v2482_v63 = vsel %vm2076_vm2, %v4967_v60, 0  ;;  %v4970_v2 = vld [vmem:[%s6041_s3 + $0x120] sm:$0xff]  }
 0x1c4   :  { %v1987_v23 = vadd.f32 %v5636_v61, %v1968_v4  ;;  %4411 = vmatpush3.bf16.msra.mxu0 %v5624_v37  ;;  %4447 = vmatpush3.bf16.msra.mxu1 %v5629_v38  ;;  %v4969_v12 = vld [vmem:[%s6041_s3 + $0x6c] sm:$0xff]  }
 0x1c5   :  { %v1986_v7 = vadd.f32 %v5636_v61, %v1967_v6  ;;  %v4386_v8 = vpop.f32.mrb[20].mxu1  ;;  %4412 = vmatprep.subr.bf16.mxu0 %v4951_v16  ;;  %4448 = vmatprep.subr.bf16.mxu1 %v4952_v22  ;;  %v4974_v4 = vld [vmem:[%s6041_s3 + $0x130] sm:$0xff]   ;;  %v4976_v6 = vld [vmem:[%s6041_s3 + $0x138] sm:$0xff]  }
 0x1c6   :  { %v1999_v11 = vmax.f32 %v1987_v23, 0.0  ;;  %v1882_v13 = vpop.f32.mrb[21].mxu1  ;;  %v4977_v23 = vld [vmem:[%s6041_s3 + $0x8c] ss:$0 sps:$4 sm:$0xff]  }
 0x1c7   :  { %v1998_v18 = vmax.f32 %v1986_v7, 0.0  ;;  %v4387_v14 = vpop.f32.mrb[22].mxu1  ;;  %v4978_v7 = vld [vmem:[%s6041_s3 + $0x140] ss:$0 sps:$4 sm:$0xff]  }
 0x1c8   :  { %v1958_v37 = vmax.f32 %v4386_v8, %v4387_v14  ;;  %v1885_v19 = vpop.f32.mrb[23].mxu1  ;;  %4413 = vmatpush3.bf16.msra.mxu0 %v4951_v16  ;;  %4449 = vmatpush3.bf16.msra.mxu1 %v4952_v22  ;;  %v4971_v16 = vld [vmem:[%s6041_s3 + $0x74] sm:$0xff]   ;;  %v4972_v22 = vld [vmem:[%s6041_s3 + $0x128] sm:$0xff]   ;;  %v2797_v8 = vsel %vm2076_vm2, %v4978_v7, 0 }
 0x1c9   :  { %v5708_v38 = vpack.c.bf16 %v1998_v18, %v1997_v51  ;;  %v5710_v20 = vpack.c.bf16 %v1999_v11, %v1998_v18  ;;  %v1957_v21 = vmax.f32 %v1882_v13, %v1885_v19  ;;  %4414 = vmatprep.subr.bf16.mxu0 %v4953_v9  ;;  %4450 = vmatprep.subr.bf16.mxu1 %v4954_v10  ;;  %v4982_v13 = vld [vmem:[%s6041_s3 + $0x14c] sm:$0xff]   ;;  %v4983_v18 = vld [vmem:[%s6041_s3 + $0xa0] sm:$0xff]   ;;  %v4984_v14 = vld [vmem:[%s6041_s3 + $0x154] sm:$0xff]  }
 0x1ca   :  { %v1970_v26 = vmax.f32 %v1946_v35, %v1958_v37  ;;  %v4985_v37 = vld [vmem:[%s6041_s3 + $0xa8] sm:$0xff]   ;;  %v4986_v19 = vld [vmem:[%s6041_s3 + $0x15c] sm:$0xff]  }
 0x1cb   :  { %v1969_v27 = vmax.f32 %v1945_v43, %v1957_v21  ;;  %4406 = vmatprep.mubr.msk.bf16.mxu0 %vm2063_vm3, %v5708_v38  ;;  %4442 = vmatprep.mubr.msk.bf16.mxu1 %vm2063_vm3, %v5708_v38  ;;  %v4988_v21 = vld [vmem:[%s6041_s3 + $0x164] ss:$0 sps:$4 sm:$0xff]  }
 0x1cc   :  { %v1989_v28 = vadd.f32 %v5636_v61, %v1970_v26  ;;  %4415 = vmatpush3.bf16.msra.mxu0 %v4953_v9  ;;  %4451 = vmatpush3.bf16.msra.mxu1 %v4954_v10  ;;  %v4979_v9 = vld [vmem:[%s6041_s3 + $0x90] sm:$0xff]   ;;  %v4980_v10 = vld [vmem:[%s6041_s3 + $0x144] sm:$0xff]  }
 0x1cd   :  { %v1988_v29 = vadd.f32 %v5636_v61, %v1969_v27  ;;  %v4390_v30 = vpop.f32.mrb[24].mxu1  ;;  %4416 = vmatprep.subr.bf16.mxu0 %v4955_v24  ;;  %4452 = vmatprep.subr.bf16.mxu1 %v4956_v25  ;;  %v4991_v26 = vld [vmem:[%s6043_s5 + $0x48] sm:$0xff]  }
 0x1ce   :  { %v2001_v32 = vmax.f32 %v1989_v28, 0.0  ;;  %v1898_v33 = vpop.f32.mrb[25].mxu1  ;;  %v4992_v27 = vld [vmem:[%s6043_s5 + $0x8] sm:$0xff]   ;;  %v4993_v28 = vld [vmem:[%s6043_s5 + $0x50] sm:$0xff]  }
 0x1cf   :  { %v2000_v34 = vmax.f32 %v1988_v29, 0.0  ;;  %v4391_v35 = vpop.f32.mrb[26].mxu1  ;;  %v4994_v29 = vld [vmem:[%s6043_s5 + $0x10] sm:$0xff]  }
 0x1d0   :  { %v1960_v36 = vmax.f32 %v4390_v30, %v4391_v35  ;;  %v1901_v39 = vpop.f32.mrb[27].mxu1  ;;  %4417 = vmatpush3.bf16.msra.mxu0 %v4955_v24  ;;  %4453 = vmatpush3.bf16.msra.mxu1 %v4956_v25  ;;  %v3009_v24 = vsel %vm2076_vm2, %v4988_v21, 0  ;;  %v4989_v25 = vld [vmem:[%s6043_s5 + $0x40] sm:$0xff]   ;;  %v4995_v30 = vld [vmem:[%s6043_s5 + $0x58] sm:$0xff]   ;;  %v5001_v35 = vld [vmem:[%s6043_s5 + $0x70] sm:$0xff]  }
 0x1d1   :  { %v5733_v40 = vpack.c.bf16 %v2000_v34, %v1999_v11  ;;  %v5735_v41 = vpack.c.bf16 %v2001_v32, %v2000_v34  ;;  %v1959_v43 = vmax.f32 %v1898_v33, %v1901_v39  ;;  %4880 = vmatprep.subr.msk.bf16.mxu0 %vm2076_vm2, %v4957_v17  ;;  %4882 = vmatprep.subr.msk.bf16.mxu1 %vm2076_vm2, %v4958_v31  ;;  %v4981_v11 = vld [vmem:[%s6041_s3 + $0x98] sm:$0xff]   ;;  %v4997_v31 = vld [vmem:[%s6043_s5 + $0x60] sm:$0xff]   ;;  %v4999_v33 = vld [vmem:[%s6043_s5 + $0x68] sm:$0xff]  }
 0x1d2   :  { %v1972_v44 = vmax.f32 %v1948_v3, %v1960_v36  ;;  %v4973_v3 = vld [vmem:[%s6041_s3 + $0x7c] sm:$0xff]   ;;  %v5000_v34 = vld [vmem:[%s6043_s5 + $0x28] sm:$0xff]   ;;  %v5002_v36 = vld [vmem:[%s6043_s5 + $0x30] sm:$0xff]  }
 0x1d3   :  { %v1971_v49 = vmax.f32 %v1947_v5, %v1959_v43  ;;  %4407 = vmatmul.mubr.msk.bf16.gmra.mrb[28].mxu0 %vm2063_vm3, %v5733_v40  ;;  %4443 = vmatmul.mubr.msk.bf16.gmra.mrb[32].mxu1 %vm2063_vm3, %v5733_v40  ;;  %v4975_v5 = vld [vmem:[%s6041_s3 + $0x84] sm:$0xff]   ;;  %v4996_v17 = vld [vmem:[%s6043_s5 + $0x18] sm:$0xff]  }
 0x1d4   :  { %v1991_v50 = vadd.f32 %v5636_v61, %v1972_v44  ;;  %4420 = vmatprep.mubr.msk.bf16.mxu0 %vm2063_vm3, %v5645_v15  ;;  %4456 = vmatprep.mubr.msk.bf16.mxu1 %vm2063_vm3, %v5645_v15  ;;  %v4962_v15 = vld [vmem:[%s6041_s3 + $0x104] sm:$0xff]  }
 0x1d5   :  { %v1990_v51 = vadd.f32 %v5636_v61, %v1971_v49  ;;  %4419 = vmatpush3.bf16.msra.mxu0 %v2191_v45  ;;  %4455 = vmatpush3.bf16.msra.mxu1 %v2381_v46  ;;  %v4963_v61 = vld [vmem:[%s6041_s3 + $0x58] sm:$0xff]  }
 0x1d6   :  { %v2003_v52 = vmax.f32 %v1991_v50, 0.0  ;;  %4464 = vmatprep.subr.bf16.mxu0 %v4959_v47  ;;  %4482 = vmatprep.subr.bf16.mxu1 %v4960_v48 }
 0x1d7   :  { %v2002_v53 = vmax.f32 %v1990_v51, 0.0 }
 0x1d9   :  { %v5757_v54 = vpack.c.bf16 %v2002_v53, %v2001_v32  ;;  %v5759_v55 = vpack.c.bf16 %v2003_v52, %v2002_v53  ;;  %v4998_v32 = vld [vmem:[%s6043_s5 + $0x20] sm:$0xff]  }
 0x1da   :  { %v3797_v53 = vld [vmem:[%s6044_s4] ss:$0 sm:$0xff] }
 0x1db   :  { %4421 = vmatmul.mubr.msk.bf16.vlgmr.msra.gmra.mrb[24].mxu0 %vm2063_vm3, %v5660_v42  ;;  %4457 = vmatmul.mubr.msk.bf16.vlgmr.msra.gmra.mrb[28].mxu1 %vm2063_vm3, %v5660_v42 }
 0x1dc   :  { %4465 = vmatpush3.bf16.msra.mxu0 %v4959_v47  ;;  %4483 = vmatpush3.bf16.msra.mxu1 %v4960_v48 }
 0x1dd   :  { %4424 = vmatprep.mubr.msk.bf16.mxu0 %vm2063_vm3, %v5679_v1  ;;  %4460 = vmatprep.mubr.msk.bf16.mxu1 %vm2063_vm3, %v5679_v1 }
 0x1de   :  { %4466 = vmatprep.subr.bf16.mxu0 %v4961_v56  ;;  %4484 = vmatprep.subr.bf16.mxu1 %v4962_v15 }
 0x1e0   :  { %4467 = vmatpush3.bf16.msra.mxu0 %v4961_v56  ;;  %4485 = vmatpush3.bf16.msra.mxu1 %v4962_v15 }
 0x1e1   :  { %4468 = vmatprep.subr.bf16.mxu0 %v4963_v61  ;;  %4486 = vmatprep.subr.bf16.mxu1 %v4964_v57 }
 0x1e3   :  { %4425 = vmatmul.mubr.msk.bf16.gmra.mrb[28].mxu0 %vm2063_vm3, %v5710_v20  ;;  %4461 = vmatmul.mubr.msk.bf16.gmra.mrb[32].mxu1 %vm2063_vm3, %v5710_v20 }
 0x1e4   :  { %4469 = vmatpush3.bf16.msra.mxu0 %v4963_v61  ;;  %4487 = vmatpush3.bf16.msra.mxu1 %v4964_v57  ;;  %v5004_v57 = vld [vmem:[%s6043_s5 + $0x38] sm:$0xff]  }
 0x1e5   :  { %4474 = vmatprep.mubr.msk.bf16.mxu0 %vm2063_vm3, %v5660_v42  ;;  %4492 = vmatprep.mubr.msk.bf16.mxu1 %vm2063_vm3, %v5660_v42  ;;  %v2585_v42 = vsel %vm2076_vm2, %v4968_v62, 0 }
 0x1e6   :  { %4470 = vmatprep.subr.bf16.mxu0 %v4965_v58  ;;  %4488 = vmatprep.subr.bf16.mxu1 %v4966_v59 }
 0x1e8   :  { %4471 = vmatpush3.bf16.msra.mxu0 %v4965_v58  ;;  %4489 = vmatpush3.bf16.msra.mxu1 %v4966_v59 }
 0x1e9   :  { %4883 = vmatprep.subr.msk.bf16.mxu0 %vm2076_vm2, %v4967_v60  ;;  %4884 = vmatprep.subr.msk.bf16.mxu1 %vm2076_vm2, %v4968_v62 }
 0x1ec   :  { %4473 = vmatpush3.bf16.msra.mxu0 %v2482_v63  ;;  %4491 = vmatpush3.bf16.msra.mxu1 %v2585_v42 }
 0x1ed   :  { %4500 = vmatprep.subr.bf16.mxu0 %v4969_v12  ;;  %4518 = vmatprep.subr.bf16.mxu1 %v4970_v2 }
 0x1ef   :  { %4475 = vmatmul.mubr.msk.bf16.vlgmr.msra.gmra.mrb[24].mxu0 %vm2063_vm3, %v5679_v1  ;;  %4493 = vmatmul.mubr.msk.bf16.vlgmr.msra.gmra.mrb[28].mxu1 %vm2063_vm3, %v5679_v1 }
 0x1f0   :  { %4478 = vmatprep.mubr.msk.bf16.mxu0 %vm2063_vm3, %v5710_v20  ;;  %4496 = vmatprep.mubr.msk.bf16.mxu1 %vm2063_vm3, %v5710_v20 }
 0x1f1   :  { %4501 = vmatpush3.bf16.msra.mxu0 %v4969_v12  ;;  %4519 = vmatpush3.bf16.msra.mxu1 %v4970_v2 }
 0x1f2   :  { %4502 = vmatprep.subr.bf16.mxu0 %v4971_v16  ;;  %4520 = vmatprep.subr.bf16.mxu1 %v4972_v22 }
 0x1f5   :  { %4503 = vmatpush3.bf16.msra.mxu0 %v4971_v16  ;;  %4521 = vmatpush3.bf16.msra.mxu1 %v4972_v22 }
 0x1f6   :  { %4504 = vmatprep.subr.bf16.mxu0 %v4973_v3  ;;  %4522 = vmatprep.subr.bf16.mxu1 %v4974_v4 }
 0x1f7   :  { %4479 = vmatmul.mubr.msk.bf16.gmra.mrb[28].mxu0 %vm2063_vm3, %v5735_v41  ;;  %4497 = vmatmul.mubr.msk.bf16.gmra.mrb[32].mxu1 %vm2063_vm3, %v5735_v41 }
 0x1f8   :  { %4510 = vmatprep.mubr.msk.bf16.mxu0 %vm2063_vm3, %v5677_v0  ;;  %4528 = vmatprep.mubr.msk.bf16.mxu1 %vm2063_vm3, %v5677_v0  ;;  %v2694_v0 = vsel %vm2076_vm2, %v4977_v23, 0 }
 0x1f9   :  { %4505 = vmatpush3.bf16.msra.mxu0 %v4973_v3  ;;  %4523 = vmatpush3.bf16.msra.mxu1 %v4974_v4 }
 0x1fa   :  { %4506 = vmatprep.subr.bf16.mxu0 %v4975_v5  ;;  %4524 = vmatprep.subr.bf16.mxu1 %v4976_v6 }
 0x1fd   :  { %4507 = vmatpush3.bf16.msra.mxu0 %v4975_v5  ;;  %4525 = vmatpush3.bf16.msra.mxu1 %v4976_v6  ;;  %v5019_v5 = vmov 0.0   ;;  %v5005_v6 = vld [vmem:[%s6045_s7] sm:$0xff]  }
 0x1fe   :  { %4885 = vmatprep.subr.msk.bf16.mxu0 %vm2076_vm2, %v4977_v23  ;;  %4886 = vmatprep.subr.msk.bf16.mxu1 %vm2076_vm2, %v4978_v7 }
 0x201   :  { %4509 = vmatpush3.bf16.msra.mxu0 %v2694_v0  ;;  %4527 = vmatpush3.bf16.msra.mxu1 %v2797_v8  ;;  %v5006_v8 = vld [vmem:[%s6045_s7 + $0x8] sm:$0xff]  }
 0x202   :  { %4536 = vmatprep.subr.bf16.mxu0 %v4979_v9  ;;  %4554 = vmatprep.subr.bf16.mxu1 %v4980_v10 }
 0x204   :  { %4511 = vmatmul.mubr.msk.bf16.vlgmr.msra.gmra.mrb[24].mxu0 %vm2063_vm3, %v5708_v38  ;;  %4529 = vmatmul.mubr.msk.bf16.vlgmr.msra.gmra.mrb[28].mxu1 %vm2063_vm3, %v5708_v38  ;;  %v4987_v38 = vld [vmem:[%s6041_s3 + $0xb0] ss:$0 sps:$4 sm:$0xff]  }
 0x205   :  { %4514 = vmatprep.mubr.msk.bf16.mxu0 %vm2063_vm3, %v5733_v40  ;;  %4532 = vmatprep.mubr.msk.bf16.mxu1 %vm2063_vm3, %v5733_v40 }
 0x206   :  { %4537 = vmatpush3.bf16.msra.mxu0 %v4979_v9  ;;  %4555 = vmatpush3.bf16.msra.mxu1 %v4980_v10 }
 0x207   :  { %4538 = vmatprep.subr.bf16.mxu0 %v4981_v11  ;;  %4556 = vmatprep.subr.bf16.mxu1 %v4982_v13 }
 0x20a   :  { %4539 = vmatpush3.bf16.msra.mxu0 %v4981_v11  ;;  %4557 = vmatpush3.bf16.msra.mxu1 %v4982_v13  ;;  %v5007_v13 = vld [vmem:[%s6045_s7 + $0x10] sm:$0xff]  }
 0x20b   :  { %4540 = vmatprep.subr.bf16.mxu0 %v4983_v18  ;;  %4558 = vmatprep.subr.bf16.mxu1 %v4984_v14 }
 0x20c   :  { %4515 = vmatmul.mubr.msk.bf16.gmra.mrb[28].mxu0 %vm2063_vm3, %v5757_v54  ;;  %4533 = vmatmul.mubr.msk.bf16.gmra.mrb[32].mxu1 %vm2063_vm3, %v5757_v54 }
 0x20d   :  { %4546 = vmatprep.mubr.msk.bf16.mxu0 %vm2063_vm3, %v5679_v1  ;;  %4564 = vmatprep.mubr.msk.bf16.mxu1 %vm2063_vm3, %v5679_v1  ;;  %v2906_v1 = vsel %vm2076_vm2, %v4987_v38, 0 }
 0x20e   :  { %4541 = vmatpush3.bf16.msra.mxu0 %v4983_v18  ;;  %4559 = vmatpush3.bf16.msra.mxu1 %v4984_v14  ;;  %v5008_v14 = vld [vmem:[%s6045_s7 + $0x18] sm:$0xff]  }
 0x20f   :  { %4542 = vmatprep.subr.bf16.mxu0 %v4985_v37  ;;  %4560 = vmatprep.subr.bf16.mxu1 %v4986_v19 }
 0x212   :  { %4543 = vmatpush3.bf16.msra.mxu0 %v4985_v37  ;;  %4561 = vmatpush3.bf16.msra.mxu1 %v4986_v19  ;;  %v5009_v37 = vld [vmem:[%s6045_s7 + $0x20] sm:$0xff]   ;;  %v5010_v19 = vld [vmem:[%s6045_s7 + $0x28] sm:$0xff]  }
 0x213   :  { %4887 = vmatprep.subr.msk.bf16.mxu0 %vm2076_vm2, %v4987_v38  ;;  %4888 = vmatprep.subr.msk.bf16.mxu1 %vm2076_vm2, %v4988_v21 }
 0x216   :  { %4545 = vmatpush3.bf16.msra.mxu0 %v2906_v1  ;;  %4563 = vmatpush3.bf16.msra.mxu1 %v3009_v24 }
 0x217   :  { %4074 = vmatprep.subr.bf16.mxu0 %v4989_v25  ;;  %4572 = vmatprep.subr.bf16.mxu1 %v5019_v5 }
 0x219   :  { %4547 = vmatmul.mubr.msk.bf16.vlgmr.msra.gmra.mrb[24].mxu0 %vm2063_vm3, %v5710_v20  ;;  %4565 = vmatmul.mubr.msk.bf16.vlgmr.msra.gmra.mrb[28].mxu1 %vm2063_vm3, %v5710_v20  ;;  %v4990_v20 = vld [vmem:[%s6043_s5] sm:$0xff]  }
 0x21a   :  { %4550 = vmatprep.mubr.msk.bf16.mxu0 %vm2063_vm3, %v5735_v41  ;;  %4568 = vmatprep.mubr.msk.bf16.mxu1 %vm2063_vm3, %v5735_v41 }
 0x21b   :  { %4075 = vmatpush3.bf16.msra.mxu0 %v4990_v20  ;;  %4573 = vmatpush3.bf16.msra.mxu1 %v5005_v6 }
 0x21c   :  { %4076 = vmatprep.subr.bf16.mxu0 %v4991_v26  ;;  %4574 = vmatprep.subr.bf16.mxu1 %v5019_v5 }
 0x21f   :  { %4077 = vmatpush3.bf16.msra.mxu0 %v4992_v27  ;;  %4575 = vmatpush3.bf16.msra.mxu1 %v5006_v8 }
 0x220   :  { %4078 = vmatprep.subr.bf16.mxu0 %v4993_v28  ;;  %4576 = vmatprep.subr.bf16.mxu1 %v5019_v5  ;;  %v5011_v28 = vld [vmem:[%s6045_s7 + $0x30] sm:$0xff]  }
 0x221   :  { %4551 = vmatmul.mubr.msk.bf16.gmra.mrb[28].mxu0 %vm2063_vm3, %v5759_v55  ;;  %4569 = vmatmul.mubr.msk.bf16.gmra.mrb[32].mxu1 %vm2063_vm3, %v5759_v55  ;;  %v5003_v55 = vld [vmem:[%s6043_s5 + $0x78] sm:$0xff]  }
 0x222   :  { %4588 = vmatprep.mubr.msk.bf16.mxu1 %vm5021_vm5, %v5019_v5 }
 0x223   :  { %4079 = vmatpush3.bf16.msra.mxu0 %v4994_v29  ;;  %4577 = vmatpush3.bf16.msra.mxu1 %v5007_v13  ;;  %v5012_v29 = vld [vmem:[%s6045_s7 + $0x38] ss:$0 sps:$4 sm:$0xff]  }
 0x224   :  { %4080 = vmatprep.subr.bf16.mxu0 %v4995_v30  ;;  %4578 = vmatprep.subr.bf16.mxu1 %v5019_v5  ;;  %v3379_v30 = vsel %vm2076_vm2, %v5012_v29, 0 }
 0x227   :  { %4081 = vmatpush3.bf16.msra.mxu0 %v4996_v17  ;;  %4579 = vmatpush3.bf16.msra.mxu1 %v5008_v14  ;;  %v5013_v17 = vld [vmem:[%s6046_s9] sm:$0xff]  }
 0x228   :  { %4082 = vmatprep.subr.bf16.mxu0 %v4997_v31  ;;  %4580 = vmatprep.subr.bf16.mxu1 %v5019_v5  ;;  %v5014_v31 = vld [vmem:[%s6046_s9 + $0x8] sm:$0xff]  }
 0x22b   :  { %4083 = vmatpush3.bf16.msra.mxu0 %v4998_v32  ;;  %4581 = vmatpush3.bf16.msra.mxu1 %v5009_v37  ;;  %v5015_v32 = vld [vmem:[%s6046_s9 + $0x10] sm:$0xff]  }
 0x22c   :  { %4084 = vmatprep.subr.bf16.mxu0 %v4999_v33  ;;  %4582 = vmatprep.subr.bf16.mxu1 %v5019_v5  ;;  %v5016_v33 = vld [vmem:[%s6046_s9 + $0x18] sm:$0xff]  }
 0x22f   :  { %4085 = vmatpush3.bf16.msra.mxu0 %v5000_v34  ;;  %4583 = vmatpush3.bf16.msra.mxu1 %v5010_v19 }
 0x230   :  { %4086 = vmatprep.subr.bf16.mxu0 %v5001_v35  ;;  %4584 = vmatprep.subr.bf16.mxu1 %v5019_v5  ;;  %v3798_v35 = vld [vmem:[%s6047_s6] ss:$0 sm:$0xff] }
 0x233   :  { %4087 = vmatpush3.bf16.msra.mxu0 %v5002_v36  ;;  %4585 = vmatpush3.bf16.msra.mxu1 %v5011_v28 }
 0x234   :  { %4088 = vmatprep.subr.bf16.mxu0 %v5003_v55  ;;  %4586 = vmatprep.subr.bf16.mxu1 %v5019_v5 }
 0x237   :  { %4089 = vmatpush3.bf16.msra.mxu0 %v5004_v57  ;;  %4587 = vmatpush3.bf16.msra.mxu1 %v3379_v30 }
 0x238   :  { %4592 = vmatprep.subr.bf16.mxu0 %v5019_v5 }
 0x2ec   :  { %v4548_v39 = vpop.f32.mrb[24].mxu0  ;;  %v4566_v40 = vpop.f32.mrb[28].mxu1 }
 0x2ed   :  { %v2942_v41 = vpop.f32.mrb[25].mxu0  ;;  %v3045_v43 = vpop.f32.mrb[29].mxu1 }
 0x2ee   :  { %v4549_v44 = vpop.f32.mrb[26].mxu0  ;;  %v4567_v45 = vpop.f32.mrb[30].mxu1 }
 0x2ef   :  { %v3085_v46 = vmax.f32 %v4548_v39, %v4549_v44  ;;  %v3089_v47 = vmax.f32 %v4566_v40, %v4567_v45  ;;  %v2945_v48 = vpop.f32.mrb[27].mxu0  ;;  %v3048_v49 = vpop.f32.mrb[31].mxu1 }
 0x2f0   :  { %v3084_v50 = vmax.f32 %v2942_v41, %v2945_v48  ;;  %v3088_v51 = vmax.f32 %v3045_v43, %v3048_v49  ;;  %v3815_v49 = vld [vmem:[%s6048_s8] ss:$0 sm:$0xff] }
 0x2f1   :  { %v3093_v52 = vmax.f32 %v3085_v46, %v3089_v47  ;;  %v5017_v46 = vld [vmem:[%s6046_s9 + $0x20] sm:$0xff]   ;;  %v5018_v47 = vld [vmem:[%s6046_s9 + $0x28] ss:$0 sps:$4 sm:$0x33]  }
 0x2f2   :  { %v3092_v54 = vmax.f32 %v3084_v50, %v3088_v51  ;;  %v3480_v48 = vsel %vm3478_vm7, %v5018_v47, 0 }
 0x2f3   :  { %v3104_v23 = vadd.f32 %v3797_v53, %v3093_v52 }
 0x2f4   :  { %v3103_v56 = vadd.f32 %v3797_v53, %v3092_v54  ;;  %v4552_v15 = vpop.f32.mrb[28].mxu0  ;;  %v4570_v61 = vpop.f32.mrb[32].mxu1 }
 0x2f5   :  { %v2958_v58 = vpop.f32.mrb[29].mxu0  ;;  %v3061_v59 = vpop.f32.mrb[33].mxu1  ;;  %v3108_v11 = vmax.f32 %v3104_v23, 0.0 }
 0x2f6   :  { %v4553_v60 = vpop.f32.mrb[30].mxu0  ;;  %v4571_v62 = vpop.f32.mrb[34].mxu1  ;;  %v3107_v21 = vmax.f32 %v3103_v56, 0.0 }
 0x2f7   :  { %v3087_v63 = vmax.f32 %v4552_v15, %v4553_v60  ;;  %v3091_v42 = vmax.f32 %v4570_v61, %v4571_v62  ;;  %v2961_v12 = vpop.f32.mrb[31].mxu0  ;;  %v3064_v2 = vpop.f32.mrb[35].mxu1  ;;  %v3112_v18 = vpack.c.bf16 %v3108_v11, %v3108_v11  ;;  %v3825_v15 = vld [vmem:[%s6049_s10] ss:$0 sm:$0xff] }
 0x2f8   :  { %v3086_v16 = vmax.f32 %v2958_v58, %v2961_v12  ;;  %v3090_v22 = vmax.f32 %v3061_v59, %v3064_v2  ;;  %v3111_v20 = vpack.c.bf16 %v3107_v21, %v3107_v21 }
 0x2f9   :  { %v3095_v3 = vmax.f32 %v3087_v63, %v3091_v42 }
 0x2fa   :  { %v3094_v4 = vmax.f32 %v3086_v16, %v3090_v22 }
 0x2fb   :  { %v3106_v7 = vadd.f32 %v3797_v53, %v3095_v3 }
 0x2fc   :  { %v3105_v0 = vadd.f32 %v3797_v53, %v3094_v4 }
 0x2fd   :  { %v3110_v9 = vmax.f32 %v3106_v7, 0.0 }
 0x2fe   :  { %v3109_v38 = vmax.f32 %v3105_v0, 0.0 }
 0x2ff   :  { %v3114_v10 = vpack.c.bf16 %v3110_v9, %v3110_v9 }
 0x300   :  { %v3113_v1 = vpack.c.bf16 %v3109_v38, %v3109_v38 }
 0x301   :  { %3119 = vrot.lane.b32.xlu0 %v3114_v10, %s5020_s22 }
 0x305   :  { %3116 = vrot.lane.b32.xlu0 %v3112_v18, %s5020_s22 }
 0x373   :  { %v3120_v24 = vpop.permute.xlu0 %3119 }
 0x374   :  { %v3128_v25 = vsel %vm3121_vm4, %v3113_v1, %v3120_v24 }
 0x375   :  { %3297 = vmatprep.mubr.bf16.mxu0 %v3128_v25 }
 0x377   :  { %v3117_v26 = vpop.permute.xlu0 %3116 }
 0x378   :  { %v3124_v27 = vsel %vm3121_vm4, %v3111_v20, %v3117_v26 }
 0x379   :  { %3298 = vmatmul.mubr.bf16.vlgmr.msra.gmra.mrb[32].mxu0 %v3124_v27 }
 0x37a   :  { %4604 = vmatprep.mubr.msk.bf16.mxu0 %vm5021_vm5, %v5019_v5  ;;  %4593 = vmatpush3.bf16.msra.mxu0 %v5013_v17 }
 0x37b   :  { %4594 = vmatprep.subr.bf16.mxu0 %v5019_v5 }
 0x37e   :  { %4595 = vmatpush3.bf16.msra.mxu0 %v5014_v31 }
 0x37f   :  { %4596 = vmatprep.subr.bf16.mxu0 %v5019_v5 }
 0x382   :  { %4597 = vmatpush3.bf16.msra.mxu0 %v5015_v32 }
 0x383   :  { %4598 = vmatprep.subr.bf16.mxu0 %v5019_v5 }
 0x386   :  { %4599 = vmatpush3.bf16.msra.mxu0 %v5016_v33 }
 0x387   :  { %4600 = vmatprep.subr.bf16.mxu0 %v5019_v5 }
 0x38a   :  { %4601 = vmatpush3.bf16.msra.mxu0 %v5017_v46 }
 0x38b   :  { %4602 = vmatprep.subr.bf16.mxu0 %v5019_v5 }
 0x38e   :  { %4603 = vmatpush3.bf16.msra.mxu0 %v3480_v48 }
 0x44c   :  { %v4090_v34 = vpop.f32.mrb[32].mxu0 }
 0x44d   :  { %v4091_v36 = vpop.f32.mrb[33].mxu0 }
 0x44e   :  { %v4092_v39 = vadd.f32 %v4091_v36, %v4090_v34  ;;  %v4093_v40 = vpop.f32.mrb[34].mxu0 }
 0x44f   :  { %v4094_v41 = vpop.f32.mrb[35].mxu0 }
 0x450   :  { %v3300_v43 = vadd.f32 %v4092_v39, %v3798_v35 }
 0x452   :  { %v3305_v44 = vmax.f32 %v3300_v43, 0.0 }
 0x454   :  { %v3306_v45 = vpack.c.bf16 %v3305_v44, %v3305_v44 }
 0x456   :  { %4589 = vmatmul.mubr.msk.bf16.vlgmr.msra.gmra.mrb[36].mxu1 %vm3374_vm6, %v3306_v45 }
 0x529   :  { %v3415_v50 = vpop.f32.mrb[36].mxu1 }
 0x52a   :  { %v3416_v51 = vadd.f32 %v3815_v49, %v3415_v50  ;;  %v4590_v52 = vpop.f32.mrb[37].mxu1 }
 0x52b   :  { %v3418_v53 = vpop.f32.mrb[38].mxu1 }
 0x52c   :  { %v3421_v54 = vmax.f32 %v3416_v51, 0.0  ;;  %v4591_v55 = vpop.f32.mrb[39].mxu1 }
 0x52e   :  { %v3422_v56 = vpack.c.bf16 %v3421_v54, %v3421_v54 }
 0x530   :  { %4605 = vmatmul.mubr.msk.bf16.vlgmr.msra.gmra.mrb[36].mxu0 %vm3474_vm8, %v3422_v56 }
 0x603   :  { %v3516_v61 = vpop.f32.mrb[36].mxu0 }
 0x604   :  { %v3517_v57 = vadd.f32 %v3825_v15, %v3516_v61  ;;  %v4606_v58 = vpop.f32.mrb[37].mxu0 }
 0x605   :  { %v3519_v59 = vpop.f32.mrb[38].mxu0 }
 0x606   :  { %3523 = vst.msk [vmem:[%s6050_s11] sm:$0xff] %vm3522_vm9, %v3517_v57  ;;  %v4607_v60 = vpop.f32.mrb[39].mxu0 }

</bundles_post_ra>
